<compile_context>
chip_gen: v7x
topology: tpu7x:2x2x1
jax: 0.10.0
libtpu: 0.0.40
codegen_flags: <defaults>
</compile_context>

<pallas_src>
import functools

import jax
import jax.numpy as jnp
from jax.experimental import pallas as pl
from jax.experimental.pallas import tpu as pltpu

_LANE = 128


def _round_up(x, m):
    return (x + m - 1) // m * m


def _hgcn_fused_kernel(ent_to_ev_ref, ev_to_ent_ref, ent_ref, ev_ref,
                       w_ev_ent_ref, b_ev_ent_ref, w_ent_ev_ref, b_ent_ev_ref,
                       ent_out_ref, ev_out_ref):
    """All GCN layers for one tile of Bt batch elements (grid axis 0)."""
    a_ee = ent_to_ev_ref[...]                     # (Bt, N_ent, N_ev)
    a_ve = ev_to_ent_ref[...]                     # (Bt, N_ev, N_ent)
    ent = ent_ref[...].astype(jnp.float32)        # (Bt, N_ent, Dp)
    ev = ev_ref[...].astype(jnp.float32)          # (Bt, N_ev,  Dp)

    bt, n_ent, dp = ent.shape
    n_ev = ev.shape[1]
    num_layers = w_ev_ent_ref.shape[0]
    adj_dtype = a_ee.dtype

    # Layers fused: ent/ev never round-trip through HBM between layers.
    # num_layers is small and static -> unrolled Python loop.
    for l in range(num_layers):
        w1 = w_ev_ent_ref[l]      # (Dp, Dp)  (already W^T)
        b1 = b_ev_ent_ref[l]      # (1,  Dp)
        w2 = w_ent_ev_ref[l]
        b2 = b_ent_ev_ref[l]

        # entity update: relu(Linear(ent_to_ev @ evidences) + entities)
        msg = jnp.einsum('bnv,bvd->bnd', a_ee, ev.astype(adj_dtype),
                         preferred_element_type=jnp.float32)
        # Flatten (Bt, N, Dp) -> (Bt*N, Dp): large-M matmul for the MXU.
        msg = jnp.dot(msg.reshape(bt * n_ent, dp), w1,
                      preferred_element_type=jnp.float32) + b1
        ent = jnp.maximum(msg.reshape(bt, n_ent, dp) + ent, 0.0)

        # evidence update: relu(Linear(ev_to_ent @ entities) + evidences)
        msg = jnp.einsum('bvn,bnd->bvd', a_ve, ent.astype(adj_dtype),
                         preferred_element_type=jnp.float32)
        msg = jnp.dot(msg.reshape(bt * n_ev, dp), w2,
                      preferred_element_type=jnp.float32) + b2
        ev = jnp.maximum(msg.reshape(bt, n_ev, dp) + ev, 0.0)

    ent_out_ref[...] = ent.astype(ent_out_ref.dtype)
    ev_out_ref[...] = ev.astype(ev_out_ref.dtype)


@functools.partial(jax.jit, static_argnames=('batch_tile', 'compute_dtype'))
def hgcn_forward(ent_to_ev, ev_to_ent, entities_mat, evidences_mat,
                 w_ev_ent_t, b_ev_ent, w_ent_ev_t, b_ent_ev,
                 batch_tile=None, compute_dtype=jnp.float32):
    """Fused multi-layer HGCN forward.

    ent_to_ev:  (B, N_ent, N_ev)     ev_to_ent:  (B, N_ev, N_ent)
    entities:   (B, N_ent, D)        evidences:  (B, N_ev, D)
    w_*_t:      (L, D, D) stacked, already transposed (y = x @ W^T + b)
    b_*:        (L, 1, D) stacked
    compute_dtype: dtype for adjacency/embedding streaming (f32 default;
                   bf16 halves HBM traffic, accumulation stays f32).
    """
    B, N_ent, N_ev = ent_to_ev.shape
    D = entities_mat.shape[-1]
    L = w_ev_ent_t.shape[0]
    out_dtype = entities_mat.dtype

    if batch_tile is None:
        # >= 2 grid steps when possible so both v7x TensorCores get work.
        batch_tile = 1 if B == 1 else min(8, max(1, B // 2))
    Bt = min(batch_tile, B)
    Bp = _round_up(B, Bt)
    Dp = _round_up(max(D, _LANE), _LANE)

    def pad_batch(x):
        return jnp.pad(x, ((0, Bp - B),) + ((0, 0),) * (x.ndim - 1))

    def pad_lane(x):
        return jnp.pad(x, ((0, 0),) * (x.ndim - 1) + ((0, Dp - D),))

    a_ee = pad_batch(ent_to_ev).astype(compute_dtype)
    a_ve = pad_batch(ev_to_ent).astype(compute_dtype)
    ent = pad_lane(pad_batch(entities_mat)).astype(compute_dtype)
    ev = pad_lane(pad_batch(evidences_mat)).astype(compute_dtype)

    # Zero-pad params to Dp: padded lanes stay exactly 0 through relu, so the
    # first D lanes of the result are unchanged.
    w1 = jnp.pad(w_ev_ent_t, ((0, 0), (0, Dp - D), (0, Dp - D))).astype(jnp.float32)
    w2 = jnp.pad(w_ent_ev_t, ((0, 0), (0, Dp - D), (0, Dp - D))).astype(jnp.float32)
    b1 = jnp.pad(b_ev_ent, ((0, 0), (0, 0), (0, Dp - D))).astype(jnp.float32)
    b2 = jnp.pad(b_ent_ev, ((0, 0), (0, 0), (0, Dp - D))).astype(jnp.float32)

    grid = (Bp // Bt,)
    isz = jnp.dtype(compute_dtype).itemsize
    osz = jnp.dtype(out_dtype).itemsize

    batch3 = lambda n1, n2: pl.BlockSpec((Bt, n1, n2), lambda b: (b, 0, 0))
    full3 = lambda shape: pl.BlockSpec(shape, lambda b: (0, 0, 0))

    # Explicit VMEM budget (double-buffered ins/outs + resident params +
    # headroom) so block sizing is honest on v7x's 64 MiB VMEM as well.
    in_bytes = Bt * (2 * N_ent * N_ev + (N_ent + N_ev) * Dp) * isz
    out_bytes = Bt * (N_ent + N_ev) * Dp * osz
    param_bytes = L * (2 * Dp * Dp + 2 * Dp) * 4
    est = 2 * (in_bytes + out_bytes) + 2 * param_bytes + (8 << 20)
    vmem_limit = int(min(100 << 20, max(est, 16 << 20)))

    ent_out, ev_out = pl.pallas_call(
        _hgcn_fused_kernel,
        out_shape=(
            jax.ShapeDtypeStruct((Bp, N_ent, Dp), out_dtype),
            jax.ShapeDtypeStruct((Bp, N_ev, Dp), out_dtype),
        ),
        grid_spec=pltpu.PrefetchScalarGridSpec(
            num_scalar_prefetch=0,
            grid=grid,
            in_specs=[
                batch3(N_ent, N_ev),     # ent_to_ev
                batch3(N_ev, N_ent),     # ev_to_ent
                batch3(N_ent, Dp),       # entities
                batch3(N_ev, Dp),        # evidences
                full3((L, Dp, Dp)), full3((L, 1, Dp)),   # w_ev_ent^T, b_ev_ent
                full3((L, Dp, Dp)), full3((L, 1, Dp)),   # w_ent_ev^T, b_ent_ev
            ],
            out_specs=[
                batch3(N_ent, Dp),
                batch3(N_ev, Dp),
            ],
        ),
        compiler_params=pltpu.CompilerParams(
            dimension_semantics=("parallel",),
            vmem_limit_bytes=vmem_limit),
    )(a_ee, a_ve, ent, ev, w1, b1, w2, b2)

    return ent_out[:B, :, :D], ev_out[:B, :, :D]


class HeterogeneousGCNPallas:
    """JAX/Pallas port of HeterogeneousGCN's GCN message-passing stack."""

    def __init__(self, config, key):
        self.num_layers = config['gnn_num_layers']
        self.emb_dimension = config['gnn_emb_dimension']
        self.dropout = config.get('gnn_dropout', 0.0)
        D = self.emb_dimension
        bound = 1.0 / float(D) ** 0.5         # torch.nn.Linear default init
        w1, b1, w2, b2 = [], [], [], []
        for _ in range(self.num_layers):
            key, k1, k2, k3, k4 = jax.random.split(key, 5)
            # Pre-transpose so the kernel computes x @ W^T + b (PyTorch Linear).
            w1.append(jax.random.uniform(k1, (D, D), jnp.float32, -bound, bound).T)
            b1.append(jax.random.uniform(k2, (1, D), jnp.float32, -bound, bound))
            w2.append(jax.random.uniform(k3, (D, D), jnp.float32, -bound, bound).T)
            b2.append(jax.random.uniform(k4, (1, D), jnp.float32, -bound, bound))
        # Stacked per-layer params so a single fused kernel loops over layers.
        self.w_ev_ent_t = jnp.stack(w1)    # (L, D, D)
        self.b_ev_ent = jnp.stack(b1)      # (L, 1, D)
        self.w_ent_ev_t = jnp.stack(w2)    # (L, D, D)
        self.b_ent_ev = jnp.stack(b2)      # (L, 1, D)

    def forward(self, batch, train=False, batch_tile=None,
                compute_dtype=jnp.float32):
        # TODO(synk): dropout with train=True (PRNG masking) not implemented;
        #             this reproduces the train=False (inference) path exactly.
        return hgcn_forward(
            batch['ent_to_ev'], batch['ev_to_ent'],
            batch['entities_mat'], batch['evidences_mat'],
            self.w_ev_ent_t, self.b_ev_ent, self.w_ent_ev_t, self.b_ent_ev,
            batch_tile=batch_tile, compute_dtype=compute_dtype)

    def reference(self, batch):
        """Pure-JAX reference of the same layer math for validation."""
        ent = batch['entities_mat']
        ev = batch['evidences_mat']
        a_ee = batch['ent_to_ev']
        a_ve = batch['ev_to_ent']
        for l in range(self.num_layers):
            m = jnp.einsum('bnv,bvd->bnd', a_ee, ev) @ self.w_ev_ent_t[l] \
                + self.b_ev_ent[l]
            ent = jax.nn.relu(m + ent)
            m = jnp.einsum('bvn,bnd->bvd', a_ve, ent) @ self.w_ent_ev_t[l] \
                + self.b_ent_ev[l]
            ev = jax.nn.relu(m + ev)
        return ent, ev


if __name__ == "__main__":
    config = {'gnn_num_layers': 3, 'gnn_emb_dimension': 32, 'gnn_dropout': 0.0}
    B, N_ent, N_ev, D = 8, 32, 16, config['gnn_emb_dimension']

    key = jax.random.PRNGKey(0)
    key, k_model, k1, k2, k3, k4 = jax.random.split(key, 6)

    model = HeterogeneousGCNPallas(config, k_model)

    # TODO(synk): EncoderFactory / AnsweringFactory have no Pallas equivalent;
    # deterministic synthetic embeddings stand in for the encoder outputs.
    entities_mat = jax.random.normal(k1, (B, N_ent, D), jnp.float32)
    evidences_mat = jax.random.normal(k2, (B, N_ev, D), jnp.float32)
    # Row-normalized adjacency-like matrices (the bmm operands in the module).
    ent_to_ev = jax.nn.softmax(jax.random.normal(k3, (B, N_ent, N_ev)), axis=-1)
    ev_to_ent = jax.nn.softmax(jax.random.normal(k4, (B, N_ev, N_ent)), axis=-1)

    batch = {
        'entities_mat': entities_mat,
        'evidences_mat': evidences_mat,
        'ent_to_ev': ent_to_ev,
        'ev_to_ent': ev_to_ent,
    }

    ent_out, ev_out = model.forward(batch, train=False, batch_tile=4)
    jax.block_until_ready((ent_out, ev_out))

    # Validate against the pure-JAX reference (f32 path -> tight tolerance).
    ent_ref, ev_ref = model.reference(batch)
    assert ent_out.shape == ent_ref.shape and ev_out.shape == ev_ref.shape
    assert jnp.allclose(ent_out, ent_ref, atol=1e-4, rtol=1e-4)
    assert jnp.allclose(ev_out, ev_ref, atol=1e-4, rtol=1e-4)

    print("KERNEL_OK")
</pallas_src>

<mosaic_0001>
module attributes {stable_mosaic.version = 11 : i64} {
  func.func @_hgcn_fused_kernel(%arg0: i32, %arg1: memref<4x32x16xf32, #tpu.memory_space<vmem>>, %arg2: memref<4x16x32xf32, #tpu.memory_space<vmem>>, %arg3: memref<4x32x128xf32, #tpu.memory_space<vmem>>, %arg4: memref<4x16x128xf32, #tpu.memory_space<vmem>>, %arg5: memref<3x128x128xf32, #tpu.memory_space<vmem>>, %arg6: memref<3x1x128xf32, #tpu.memory_space<vmem>>, %arg7: memref<3x128x128xf32, #tpu.memory_space<vmem>>, %arg8: memref<3x1x128xf32, #tpu.memory_space<vmem>>, %arg9: memref<4x32x128xf32, #tpu.memory_space<vmem>>, %arg10: memref<4x16x128xf32, #tpu.memory_space<vmem>>) attributes {dimension_semantics = [#tpu.dimension_semantics<parallel>], iteration_bounds = array<i64: 2>, scalar_prefetch = 0 : i64, scratch_operands = 0 : i64, tpu.core_type = #tpu.core_type<tc>, window_params = [{transform_indices = @transform_0, window_bounds = array<i64: 4, 32, 16>}, {transform_indices = @transform_1, window_bounds = array<i64: 4, 16, 32>}, {transform_indices = @transform_2, window_bounds = array<i64: 4, 32, 128>}, {transform_indices = @transform_3, window_bounds = array<i64: 4, 16, 128>}, {pipeline_mode = #tpu.pipeline_mode<synchronous>, transform_indices = @transform_4, window_bounds = array<i64: 3, 128, 128>}, {pipeline_mode = #tpu.pipeline_mode<synchronous>, transform_indices = @transform_5, window_bounds = array<i64: 3, 1, 128>}, {pipeline_mode = #tpu.pipeline_mode<synchronous>, transform_indices = @transform_6, window_bounds = array<i64: 3, 128, 128>}, {pipeline_mode = #tpu.pipeline_mode<synchronous>, transform_indices = @transform_7, window_bounds = array<i64: 3, 1, 128>}, {transform_indices = @transform_8, window_bounds = array<i64: 4, 32, 128>}, {transform_indices = @transform_9, window_bounds = array<i64: 4, 16, 128>}]} {
    %c0 = arith.constant 0 : index
    %c0_0 = arith.constant 0 : index
    %c0_1 = arith.constant 0 : index
    %0 = vector.load %arg1[%c0, %c0_0, %c0_1] : memref<4x32x16xf32, #tpu.memory_space<vmem>>, vector<4x32x16xf32>
    %c0_2 = arith.constant 0 : index
    %c0_3 = arith.constant 0 : index
    %c0_4 = arith.constant 0 : index
    %1 = vector.load %arg2[%c0_2, %c0_3, %c0_4] : memref<4x16x32xf32, #tpu.memory_space<vmem>>, vector<4x16x32xf32>
    %c0_5 = arith.constant 0 : index
    %c0_6 = arith.constant 0 : index
    %c0_7 = arith.constant 0 : index
    %2 = vector.load %arg3[%c0_5, %c0_6, %c0_7] : memref<4x32x128xf32, #tpu.memory_space<vmem>>, vector<4x32x128xf32>
    %c0_8 = arith.constant 0 : index
    %c0_9 = arith.constant 0 : index
    %c0_10 = arith.constant 0 : index
    %3 = vector.load %arg4[%c0_8, %c0_9, %c0_10] : memref<4x16x128xf32, #tpu.memory_space<vmem>>, vector<4x16x128xf32>
    %c0_11 = arith.constant 0 : index
    %c0_12 = arith.constant 0 : index
    %c0_13 = arith.constant 0 : index
    %4 = vector.load %arg5[%c0_11, %c0_12, %c0_13] : memref<3x128x128xf32, #tpu.memory_space<vmem>>, vector<1x128x128xf32>
    %5 = vector.shape_cast %4 : vector<1x128x128xf32> to vector<128x128xf32>
    %c0_14 = arith.constant 0 : index
    %c0_15 = arith.constant 0 : index
    %c0_16 = arith.constant 0 : index
    %6 = vector.load %arg6[%c0_14, %c0_15, %c0_16] : memref<3x1x128xf32, #tpu.memory_space<vmem>>, vector<1x1x128xf32>
    %7 = vector.shape_cast %6 : vector<1x1x128xf32> to vector<1x128xf32>
    %c0_17 = arith.constant 0 : index
    %c0_18 = arith.constant 0 : index
    %c0_19 = arith.constant 0 : index
    %8 = vector.load %arg7[%c0_17, %c0_18, %c0_19] : memref<3x128x128xf32, #tpu.memory_space<vmem>>, vector<1x128x128xf32>
    %9 = vector.shape_cast %8 : vector<1x128x128xf32> to vector<128x128xf32>
    %c0_20 = arith.constant 0 : index
    %c0_21 = arith.constant 0 : index
    %c0_22 = arith.constant 0 : index
    %10 = vector.load %arg8[%c0_20, %c0_21, %c0_22] : memref<3x1x128xf32, #tpu.memory_space<vmem>>, vector<1x1x128xf32>
    %11 = vector.shape_cast %10 : vector<1x1x128xf32> to vector<1x128xf32>
    "tpu.trace_start"() <{level = 10 : i32, message = "bnv,bvd->bnd"}> : () -> ()
    %cst = arith.constant dense<0.000000e+00> : vector<4x32x128xf32>
    %12 = tpu.matmul %0, %3, %cst {dimension_numbers = #tpu.dot_dimension_numbers<[2], [1], [1], [2], [0, 0, 0, 1, 1, 2], [0], [0]>} : vector<4x32x16xf32>, vector<4x16x128xf32>, vector<4x32x128xf32> -> vector<4x32x128xf32>
    "tpu.trace_stop"() : () -> ()
    %13 = vector.shape_cast %12 : vector<4x32x128xf32> to vector<128x128xf32>
    %cst_23 = arith.constant dense<0.000000e+00> : vector<128x128xf32>
    %14 = tpu.matmul %13, %5, %cst_23 {dimension_numbers = #tpu.dot_dimension_numbers<[1], [0], [0], [1], [0, 0, 1, 1], [], []>} : vector<128x128xf32>, vector<128x128xf32>, vector<128x128xf32> -> vector<128x128xf32>
    %15 = vector.broadcast %7 : vector<1x128xf32> to vector<128x128xf32>
    %16 = arith.addf %14, %15 : vector<128x128xf32>
    %17 = vector.shape_cast %16 : vector<128x128xf32> to vector<4x32x128xf32>
    %18 = arith.addf %17, %2 : vector<4x32x128xf32>
    %cst_24 = arith.constant 0.000000e+00 : f32
    %19 = vector.broadcast %cst_24 : f32 to vector<4x32x128xf32>
    %20 = arith.maximumf %18, %19 : vector<4x32x128xf32>
    "tpu.trace_start"() <{level = 10 : i32, message = "bvn,bnd->bvd"}> : () -> ()
    %cst_25 = arith.constant dense<0.000000e+00> : vector<4x16x128xf32>
    %21 = tpu.matmul %1, %20, %cst_25 {dimension_numbers = #tpu.dot_dimension_numbers<[2], [1], [1], [2], [0, 0, 0, 1, 1, 2], [0], [0]>} : vector<4x16x32xf32>, vector<4x32x128xf32>, vector<4x16x128xf32> -> vector<4x16x128xf32>
    "tpu.trace_stop"() : () -> ()
    %22 = vector.shape_cast %21 : vector<4x16x128xf32> to vector<64x128xf32>
    %cst_26 = arith.constant dense<0.000000e+00> : vector<64x128xf32>
    %23 = tpu.matmul %22, %9, %cst_26 {dimension_numbers = #tpu.dot_dimension_numbers<[1], [0], [0], [1], [0, 0, 1, 1], [], []>} : vector<64x128xf32>, vector<128x128xf32>, vector<64x128xf32> -> vector<64x128xf32>
    %24 = vector.broadcast %11 : vector<1x128xf32> to vector<64x128xf32>
    %25 = arith.addf %23, %24 : vector<64x128xf32>
    %26 = vector.shape_cast %25 : vector<64x128xf32> to vector<4x16x128xf32>
    %27 = arith.addf %26, %3 : vector<4x16x128xf32>
    %cst_27 = arith.constant 0.000000e+00 : f32
    %28 = vector.broadcast %cst_27 : f32 to vector<4x16x128xf32>
    %29 = arith.maximumf %27, %28 : vector<4x16x128xf32>
    %c1 = arith.constant 1 : index
    %c0_28 = arith.constant 0 : index
    %c0_29 = arith.constant 0 : index
    %30 = vector.load %arg5[%c1, %c0_28, %c0_29] : memref<3x128x128xf32, #tpu.memory_space<vmem>>, vector<1x128x128xf32>
    %31 = vector.shape_cast %30 : vector<1x128x128xf32> to vector<128x128xf32>
    %c1_30 = arith.constant 1 : index
    %c0_31 = arith.constant 0 : index
    %c0_32 = arith.constant 0 : index
    %32 = vector.load %arg6[%c1_30, %c0_31, %c0_32] : memref<3x1x128xf32, #tpu.memory_space<vmem>>, vector<1x1x128xf32>
    %33 = vector.shape_cast %32 : vector<1x1x128xf32> to vector<1x128xf32>
    %c1_33 = arith.constant 1 : index
    %c0_34 = arith.constant 0 : index
    %c0_35 = arith.constant 0 : index
    %34 = vector.load %arg7[%c1_33, %c0_34, %c0_35] : memref<3x128x128xf32, #tpu.memory_space<vmem>>, vector<1x128x128xf32>
    %35 = vector.shape_cast %34 : vector<1x128x128xf32> to vector<128x128xf32>
    %c1_36 = arith.constant 1 : index
    %c0_37 = arith.constant 0 : index
    %c0_38 = arith.constant 0 : index
    %36 = vector.load %arg8[%c1_36, %c0_37, %c0_38] : memref<3x1x128xf32, #tpu.memory_space<vmem>>, vector<1x1x128xf32>
    %37 = vector.shape_cast %36 : vector<1x1x128xf32> to vector<1x128xf32>
    "tpu.trace_start"() <{level = 10 : i32, message = "bnv,bvd->bnd"}> : () -> ()
    %cst_39 = arith.constant dense<0.000000e+00> : vector<4x32x128xf32>
    %38 = tpu.matmul %0, %29, %cst_39 {dimension_numbers = #tpu.dot_dimension_numbers<[2], [1], [1], [2], [0, 0, 0, 1, 1, 2], [0], [0]>} : vector<4x32x16xf32>, vector<4x16x128xf32>, vector<4x32x128xf32> -> vector<4x32x128xf32>
    "tpu.trace_stop"() : () -> ()
    %39 = vector.shape_cast %38 : vector<4x32x128xf32> to vector<128x128xf32>
    %cst_40 = arith.constant dense<0.000000e+00> : vector<128x128xf32>
    %40 = tpu.matmul %39, %31, %cst_40 {dimension_numbers = #tpu.dot_dimension_numbers<[1], [0], [0], [1], [0, 0, 1, 1], [], []>} : vector<128x128xf32>, vector<128x128xf32>, vector<128x128xf32> -> vector<128x128xf32>
    %41 = vector.broadcast %33 : vector<1x128xf32> to vector<128x128xf32>
    %42 = arith.addf %40, %41 : vector<128x128xf32>
    %43 = vector.shape_cast %42 : vector<128x128xf32> to vector<4x32x128xf32>
    %44 = arith.addf %43, %20 : vector<4x32x128xf32>
    %cst_41 = arith.constant 0.000000e+00 : f32
    %45 = vector.broadcast %cst_41 : f32 to vector<4x32x128xf32>
    %46 = arith.maximumf %44, %45 : vector<4x32x128xf32>
    "tpu.trace_start"() <{level = 10 : i32, message = "bvn,bnd->bvd"}> : () -> ()
    %cst_42 = arith.constant dense<0.000000e+00> : vector<4x16x128xf32>
    %47 = tpu.matmul %1, %46, %cst_42 {dimension_numbers = #tpu.dot_dimension_numbers<[2], [1], [1], [2], [0, 0, 0, 1, 1, 2], [0], [0]>} : vector<4x16x32xf32>, vector<4x32x128xf32>, vector<4x16x128xf32> -> vector<4x16x128xf32>
    "tpu.trace_stop"() : () -> ()
    %48 = vector.shape_cast %47 : vector<4x16x128xf32> to vector<64x128xf32>
    %cst_43 = arith.constant dense<0.000000e+00> : vector<64x128xf32>
    %49 = tpu.matmul %48, %35, %cst_43 {dimension_numbers = #tpu.dot_dimension_numbers<[1], [0], [0], [1], [0, 0, 1, 1], [], []>} : vector<64x128xf32>, vector<128x128xf32>, vector<64x128xf32> -> vector<64x128xf32>
    %50 = vector.broadcast %37 : vector<1x128xf32> to vector<64x128xf32>
    %51 = arith.addf %49, %50 : vector<64x128xf32>
    %52 = vector.shape_cast %51 : vector<64x128xf32> to vector<4x16x128xf32>
    %53 = arith.addf %52, %29 : vector<4x16x128xf32>
    %cst_44 = arith.constant 0.000000e+00 : f32
    %54 = vector.broadcast %cst_44 : f32 to vector<4x16x128xf32>
    %55 = arith.maximumf %53, %54 : vector<4x16x128xf32>
    %c2 = arith.constant 2 : index
    %c0_45 = arith.constant 0 : index
    %c0_46 = arith.constant 0 : index
    %56 = vector.load %arg5[%c2, %c0_45, %c0_46] : memref<3x128x128xf32, #tpu.memory_space<vmem>>, vector<1x128x128xf32>
    %57 = vector.shape_cast %56 : vector<1x128x128xf32> to vector<128x128xf32>
    %c2_47 = arith.constant 2 : index
    %c0_48 = arith.constant 0 : index
    %c0_49 = arith.constant 0 : index
    %58 = vector.load %arg6[%c2_47, %c0_48, %c0_49] : memref<3x1x128xf32, #tpu.memory_space<vmem>>, vector<1x1x128xf32>
    %59 = vector.shape_cast %58 : vector<1x1x128xf32> to vector<1x128xf32>
    %c2_50 = arith.constant 2 : index
    %c0_51 = arith.constant 0 : index
    %c0_52 = arith.constant 0 : index
    %60 = vector.load %arg7[%c2_50, %c0_51, %c0_52] : memref<3x128x128xf32, #tpu.memory_space<vmem>>, vector<1x128x128xf32>
    %61 = vector.shape_cast %60 : vector<1x128x128xf32> to vector<128x128xf32>
    %c2_53 = arith.constant 2 : index
    %c0_54 = arith.constant 0 : index
    %c0_55 = arith.constant 0 : index
    %62 = vector.load %arg8[%c2_53, %c0_54, %c0_55] : memref<3x1x128xf32, #tpu.memory_space<vmem>>, vector<1x1x128xf32>
    %63 = vector.shape_cast %62 : vector<1x1x128xf32> to vector<1x128xf32>
    "tpu.trace_start"() <{level = 10 : i32, message = "bnv,bvd->bnd"}> : () -> ()
    %cst_56 = arith.constant dense<0.000000e+00> : vector<4x32x128xf32>
    %64 = tpu.matmul %0, %55, %cst_56 {dimension_numbers = #tpu.dot_dimension_numbers<[2], [1], [1], [2], [0, 0, 0, 1, 1, 2], [0], [0]>} : vector<4x32x16xf32>, vector<4x16x128xf32>, vector<4x32x128xf32> -> vector<4x32x128xf32>
    "tpu.trace_stop"() : () -> ()
    %65 = vector.shape_cast %64 : vector<4x32x128xf32> to vector<128x128xf32>
    %cst_57 = arith.constant dense<0.000000e+00> : vector<128x128xf32>
    %66 = tpu.matmul %65, %57, %cst_57 {dimension_numbers = #tpu.dot_dimension_numbers<[1], [0], [0], [1], [0, 0, 1, 1], [], []>} : vector<128x128xf32>, vector<128x128xf32>, vector<128x128xf32> -> vector<128x128xf32>
    %67 = vector.broadcast %59 : vector<1x128xf32> to vector<128x128xf32>
    %68 = arith.addf %66, %67 : vector<128x128xf32>
    %69 = vector.shape_cast %68 : vector<128x128xf32> to vector<4x32x128xf32>
    %70 = arith.addf %69, %46 : vector<4x32x128xf32>
    %cst_58 = arith.constant 0.000000e+00 : f32
    %71 = vector.broadcast %cst_58 : f32 to vector<4x32x128xf32>
    %72 = arith.maximumf %70, %71 : vector<4x32x128xf32>
    "tpu.trace_start"() <{level = 10 : i32, message = "bvn,bnd->bvd"}> : () -> ()
    %cst_59 = arith.constant dense<0.000000e+00> : vector<4x16x128xf32>
    %73 = tpu.matmul %1, %72, %cst_59 {dimension_numbers = #tpu.dot_dimension_numbers<[2], [1], [1], [2], [0, 0, 0, 1, 1, 2], [0], [0]>} : vector<4x16x32xf32>, vector<4x32x128xf32>, vector<4x16x128xf32> -> vector<4x16x128xf32>
    "tpu.trace_stop"() : () -> ()
    %74 = vector.shape_cast %73 : vector<4x16x128xf32> to vector<64x128xf32>
    %cst_60 = arith.constant dense<0.000000e+00> : vector<64x128xf32>
    %75 = tpu.matmul %74, %61, %cst_60 {dimension_numbers = #tpu.dot_dimension_numbers<[1], [0], [0], [1], [0, 0, 1, 1], [], []>} : vector<64x128xf32>, vector<128x128xf32>, vector<64x128xf32> -> vector<64x128xf32>
    %76 = vector.broadcast %63 : vector<1x128xf32> to vector<64x128xf32>
    %77 = arith.addf %75, %76 : vector<64x128xf32>
    %78 = vector.shape_cast %77 : vector<64x128xf32> to vector<4x16x128xf32>
    %79 = arith.addf %78, %55 : vector<4x16x128xf32>
    %cst_61 = arith.constant 0.000000e+00 : f32
    %80 = vector.broadcast %cst_61 : f32 to vector<4x16x128xf32>
    %81 = arith.maximumf %79, %80 : vector<4x16x128xf32>
    %c0_62 = arith.constant 0 : index
    %c0_63 = arith.constant 0 : index
    %c0_64 = arith.constant 0 : index
    %82 = vector.load %arg9[%c0_62, %c0_63, %c0_64] : memref<4x32x128xf32, #tpu.memory_space<vmem>>, vector<4x32x128xf32>
    tpu.vector_store %arg9[%c0_62, %c0_63, %c0_64], %72 {strides = array<i32>} : memref<4x32x128xf32, #tpu.memory_space<vmem>>, vector<4x32x128xf32>,
    %c0_65 = arith.constant 0 : index
    %c0_66 = arith.constant 0 : index
    %c0_67 = arith.constant 0 : index
    %83 = vector.load %arg10[%c0_65, %c0_66, %c0_67] : memref<4x16x128xf32, #tpu.memory_space<vmem>>, vector<4x16x128xf32>
    tpu.vector_store %arg10[%c0_65, %c0_66, %c0_67], %81 {strides = array<i32>} : memref<4x16x128xf32, #tpu.memory_space<vmem>>, vector<4x16x128xf32>,
    return
  }
  func.func @transform_0(%arg0: i32) -> (i32, i32, i32) {
    %c0_i32 = arith.constant 0 : i32
    %c0_i32_0 = arith.constant 0 : i32
    %c0_i32_1 = arith.constant 0 : i32
    return %arg0, %c0_i32, %c0_i32_0 : i32, i32, i32
  }
  func.func @transform_1(%arg0: i32) -> (i32, i32, i32) {
    %c0_i32 = arith.constant 0 : i32
    %c0_i32_0 = arith.constant 0 : i32
    %c0_i32_1 = arith.constant 0 : i32
    return %arg0, %c0_i32, %c0_i32_0 : i32, i32, i32
  }
  func.func @transform_2(%arg0: i32) -> (i32, i32, i32) {
    %c0_i32 = arith.constant 0 : i32
    %c0_i32_0 = arith.constant 0 : i32
    %c0_i32_1 = arith.constant 0 : i32
    return %arg0, %c0_i32, %c0_i32_0 : i32, i32, i32
  }
  func.func @transform_3(%arg0: i32) -> (i32, i32, i32) {
    %c0_i32 = arith.constant 0 : i32
    %c0_i32_0 = arith.constant 0 : i32
    %c0_i32_1 = arith.constant 0 : i32
    return %arg0, %c0_i32, %c0_i32_0 : i32, i32, i32
  }
  func.func @transform_4(%arg0: i32) -> (i32, i32, i32) {
    %c0_i32 = arith.constant 0 : i32
    %c0_i32_0 = arith.constant 0 : i32
    %c0_i32_1 = arith.constant 0 : i32
    %c0_i32_2 = arith.constant 0 : i32
    return %c0_i32, %c0_i32_0, %c0_i32_1 : i32, i32, i32
  }
  func.func @transform_5(%arg0: i32) -> (i32, i32, i32) {
    %c0_i32 = arith.constant 0 : i32
    %c0_i32_0 = arith.constant 0 : i32
    %c0_i32_1 = arith.constant 0 : i32
    %c0_i32_2 = arith.constant 0 : i32
    return %c0_i32, %c0_i32_0, %c0_i32_1 : i32, i32, i32
  }
  func.func @transform_6(%arg0: i32) -> (i32, i32, i32) {
    %c0_i32 = arith.constant 0 : i32
    %c0_i32_0 = arith.constant 0 : i32
    %c0_i32_1 = arith.constant 0 : i32
    %c0_i32_2 = arith.constant 0 : i32
    return %c0_i32, %c0_i32_0, %c0_i32_1 : i32, i32, i32
  }
  func.func @transform_7(%arg0: i32) -> (i32, i32, i32) {
    %c0_i32 = arith.constant 0 : i32
    %c0_i32_0 = arith.constant 0 : i32
    %c0_i32_1 = arith.constant 0 : i32
    %c0_i32_2 = arith.constant 0 : i32
    return %c0_i32, %c0_i32_0, %c0_i32_1 : i32, i32, i32
  }
  func.func @transform_8(%arg0: i32) -> (i32, i32, i32) {
    %c0_i32 = arith.constant 0 : i32
    %c0_i32_0 = arith.constant 0 : i32
    %c0_i32_1 = arith.constant 0 : i32
    return %arg0, %c0_i32, %c0_i32_0 : i32, i32, i32
  }
  func.func @transform_9(%arg0: i32) -> (i32, i32, i32) {
    %c0_i32 = arith.constant 0 : i32
    %c0_i32_0 = arith.constant 0 : i32
    %c0_i32_1 = arith.constant 0 : i32
    return %arg0, %c0_i32, %c0_i32_0 : i32, i32, i32
  }
}

</mosaic_0001>

<bundles_post_ra>
// kernel: hgcn_forward.1
= control target key start
LH: loop header
LB: loop body
LE: loop exit
PB: predicated region body
PF: predicated region fallthrough
CT: control target
= control target key end

     0   :  { %s6460_s0 = inlined_call_operand.vmem [shape: f32[8,32,16], index: 0, kind: input, shape index: {}]   ;;  %s6461_s1 = inlined_call_operand.vmem [shape: f32[8,16,32], index: 1, kind: input, shape index: {}]   ;;  %s6462_s2 = inlined_call_operand.vmem [shape: f32[8,32,128], index: 2, kind: input, shape index: {}]   ;;  %s6463_s3 = inlined_call_operand.vmem [shape: f32[8,16,128], index: 3, kind: input, shape index: {}]   ;;  %s6464_s4 = inlined_call_operand.vmem [shape: f32[3,128,128], index: 4, kind: input, shape index: {}]   ;;  %s6465_s5 = inlined_call_operand.vmem [shape: f32[3,1,128], index: 5, kind: input, shape index: {}]   ;;  %s6466_s6 = inlined_call_operand.vmem [shape: f32[3,128,128], index: 6, kind: input, shape index: {}]   ;;  %s6467_s7 = inlined_call_operand.vmem [shape: f32[3,1,128], index: 7, kind: input, shape index: {}]   ;;  %s6468_s8 = inlined_call_operand.hbm [shape: f32[8,32,128], index: 8, kind: output, shape index: {0}]   ;;  %s6469_s9 = inlined_call_operand.hbm [shape: f32[8,16,128], index: 9, kind: output, shape index: {1}]  }
   0x1   :  { %6482 = sst [smem:[#allocation8_spill]] %s6460_s0 }
   0x2   :  { %15 = vsyncpa [#allocation3], 0 }
   0x3   :  { %17 = vsyncpa [#allocation3 + $0x1], 0 }
   0x4   :  { %18 = vsyncpa [#allocation5], 0 }
   0x5   :  { %20 = vsyncpa [#allocation5 + $0x1], 0  ;;  %s5299_s30 = smov 0   ;;  %s5301_s10 = smov 0  }
   0x6   :  { %s5303_s11 = smov 0   ;;  %s5305_s12 = smov 0  }
   0x7 LB: > { %s5320_s13 = sadd.s32 4294967295, %s5243_s12   ;;  %s3697_s14 = sadd.s32 4294967294, %s5243_s12   ;;  %s5243_s12 = sphi %s5305_s12, %s6501_s12   ;;  %s5239_s11 = sphi %s5303_s11, %s6500_s11   ;;  %s5235_s10 = sphi %s5301_s10, %s6499_s10   ;;  %s5231_s30 = sphi %s5299_s30, %s6498_s30  }
   0x8   : > { %s5324_s15 = sadd.s32 1, %s5243_s12   ;;  %s221_s16 = sadd.s32 1, %s5239_s11 }
   0x9   : > { %s218_s17 = ssub.s32 %s5243_s12, %s5324_s15  ;;  %p231_p0 = scmp.ne.s32.totalorder %s5239_s11, %s5235_s10 }
   0xa   : > { %p219_p1 = scmp.eq.s32.totalorder %s218_s17, 0  ;;  %p232_p2 = scmp.eq.s32.totalorder %s5320_s13, 1 }
   0xb   : > { %p237_p3 = scmp.ne.s32.totalorder %s5235_s10, %s5231_s30  ;;  %p238_p4 = scmp.eq.s32.totalorder %s3697_s14, 1 }
   0xc   : > { %s5335_s18 = scalar_select %p219_p1, %s5239_s11, %s221_s16  }
   0xd   : > { %p5337_p5 = por %p232_p2, %p231_p0  ;;  %p5341_p6 = por %p238_p4, %p237_p3 }
   0xe   : > { %p3700_p7 = scmp.ge.s32.totalorder %s5243_s12, 1  ;;  %p334_p8 = scmp.lt.s32.totalorder %s5243_s12, 3 }
  0x10   : > { %p335_p9 = pnand %p3700_p7, %p334_p8 }
  0x11   : > { %s3703_s21 = sshll.u32 (!%p335_p9), %s5320_s13, 2  ;;  %vm506_vm0 = vcmask (!%p335_p9), 130048   ;;  %s6485_s0 = sld [smem:[#allocation8_spill]] (!%p335_p9)  ;;  %v472_v19 = vld [vmem:[%s6464_s4] sm:$0xff] (!%p335_p9)  ;;  %v473_v20 = vld [vmem:[%s6464_s4 + $0x8] sm:$0xff] (!%p335_p9)  ;;  %v474_v28 = vld [vmem:[%s6464_s4 + $0x10] sm:$0xff] (!%p335_p9) }
  0x12   : > { %338 = sbr.rel (%p335_p9) target bundleno = 2714 (0xa9a), region = 52  ;;  %p395_p10 = scmp.lt.s32.totalorder (!%p335_p9), %s3703_s21, 7  ;;  %v4759_v24 = vpack.c.bf16 (!%p335_p9), %v473_v20, %v472_v19  ;;  %v475_v29 = vld [vmem:[%s6464_s4 + $0x18] sm:$0xff] (!%p335_p9)  ;;  %v476_v33 = vld [vmem:[%s6464_s4 + $0x20] sm:$0xff] (!%p335_p9)  ;;  %v477_v34 = vld [vmem:[%s6464_s4 + $0x28] sm:$0xff] (!%p335_p9)  ;;  %vm1078_vm1 = vcmask (!%p335_p9), 261120  }
  0x13   : > { %v4763_v32 = vpack.c.bf16 (!%p335_p9), %v475_v29, %v474_v28  ;;  %v4767_v36 = vpack.c.bf16 (!%p335_p9), %v477_v34, %v476_v33  ;;  %v478_v37 = vld [vmem:[%s6464_s4 + $0x30] sm:$0xff] (!%p335_p9)  ;;  %v479_v38 = vld [vmem:[%s6464_s4 + $0x38] sm:$0xff] (!%p335_p9)  ;;  %v480_v40 = vld [vmem:[%s6464_s4 + $0x40] sm:$0xff] (!%p335_p9) }
  0x14   : > { %v4771_v39 = vpack.c.bf16 (!%p335_p9), %v479_v38, %v478_v37  ;;  %v481_v41 = vld [vmem:[%s6464_s4 + $0x48] sm:$0xff] (!%p335_p9)  ;;  %v482_v43 = vld [vmem:[%s6464_s4 + $0x50] sm:$0xff] (!%p335_p9)  ;;  %v483_v44 = vld [vmem:[%s6464_s4 + $0x58] sm:$0xff] (!%p335_p9) }
  0x15   : > { %v4775_v42 = vpack.c.bf16 (!%p335_p9), %v481_v41, %v480_v40  ;;  %v4779_v45 = vpack.c.bf16 (!%p335_p9), %v483_v44, %v482_v43  ;;  %v484_v46 = vld [vmem:[%s6464_s4 + $0x60] sm:$0xff] (!%p335_p9)  ;;  %v485_v47 = vld [vmem:[%s6464_s4 + $0x68] sm:$0xff] (!%p335_p9)  ;;  %v486_v49 = vld [vmem:[%s6464_s4 + $0x70] sm:$0xff] (!%p335_p9) }
  0x16   : > { %v4783_v48 = vpack.c.bf16 (!%p335_p9), %v485_v47, %v484_v46  ;;  %v487_v50 = vld [vmem:[%s6464_s4 + $0x78] sm:$0xff] (!%p335_p9)  ;;  %v489_v20 = vld [vmem:[%s6466_s6] sm:$0xff] (!%p335_p9)  ;;  %v491_v28 = vld [vmem:[%s6466_s6 + $0x10] sm:$0xff] (!%p335_p9) }
  0x17   : > { %v4787_v51 = vpack.c.bf16 (!%p335_p9), %v487_v50, %v486_v49  ;;  %v493_v34 = vld [vmem:[%s6466_s6 + $0x20] sm:$0xff] (!%p335_p9)  ;;  %v495_v38 = vld [vmem:[%s6466_s6 + $0x30] sm:$0xff] (!%p335_p9) }
  0x18   : > { %v497_v41 = vld [vmem:[%s6466_s6 + $0x40] sm:$0xff] (!%p335_p9)  ;;  %v499_v44 = vld [vmem:[%s6466_s6 + $0x50] sm:$0xff] (!%p335_p9) }
  0x19   : > { %s6503_s21 = smov (!%p395_p10, %s3703_s21), 7  ;;  %v501_v47 = vld [vmem:[%s6466_s6 + $0x60] sm:$0xff]  ;;  %v503_v50 = vld [vmem:[%s6466_s6 + $0x70] sm:$0xff] }
  0x1a   : > { %s6470_s22 = sshll.u32 %s6503_s21, 5  ;;  %s3872_s23 = sshll.u32 %s6503_s21, 4 }
  0x1b   : > { %s5357_s26 = scalar_lea.vmem %s6485_s0, %s6470_s22  ;;  %s420_s29 = scalar_lea.vmem %s6463_s3, %s3872_s23 }
  0x1c   : > { %v5365_v0 = vld [vmem:[%s5357_s26] sm:$0xff]  ;;  %v5369_v2 = vld [vmem:[%s420_s29 + $0x8] sm:$0xff]  ;;  %v5375_v4 = vld [vmem:[%s420_s29 + $0x10] sm:$0xff]  ;;  %s5521_s17 = scalar_lea.vmem %s6461_s1, %s3872_s23  ;;  %s6486_s22 = sshll.u32 %s6503_s21, 5 }
  0x1d   : > { %v5367_v1 = vld [vmem:[%s420_s29] sm:$0xff]  ;;  %4195 = vmatprep.mubr.msk.f32.mxu0 %vm506_vm0, %v5365_v0  ;;  %v5377_v5 = vld [vmem:[%s420_s29 + $0x18] sm:$0xff]  ;;  %v5383_v8 = vld [vmem:[%s420_s29 + $0x28] sm:$0xff]  ;;  %s6253_s23 = sand.u32 1, %s5235_s10   ;;  %s5245_s0 = smov [#allocation2]  }
  0x1e   : > { %v4743_v3 = vpack.c.bf16 %v5369_v2, %v5367_v1  ;;  %v4747_v6 = vpack.c.bf16 %v5377_v5, %v5375_v4  ;;  %v5381_v7 = vld [vmem:[%s420_s29 + $0x20] sm:$0xff]  ;;  %v5386_v9 = vld [vmem:[%s5357_s26 + $0x8] sm:$0xff]  ;;  %v5389_v10 = vld [vmem:[%s5357_s26 + $0x10] sm:$0xff]  ;;  %s3701_s16 = sshll.u32 %s6253_s23, 7  ;;  %s3531_s28 = scalar_lea.sflag [#allocation3], %s6253_s23 }
  0x1f   : > { %v4751_v11 = vpack.c.bf16 %v5383_v8, %v5381_v7  ;;  %v5393_v12 = vld [vmem:[%s420_s29 + $0x30] sm:$0xff]  ;;  %v5395_v13 = vld [vmem:[%s420_s29 + $0x38] sm:$0xff]  ;;  %v5398_v14 = vld [vmem:[%s5357_s26 + $0x60] sm:$0xff]  ;;  %s5581_s29 = scalar_lea.vmem %s6462_s2, %s6486_s22  ;;  %s5153_s21 = sshll.u32 %s5245_s0, 4  ;;  %s5154_s21 = int_to_ptr.vmem [resolvable:$false] %s5153_s21 }
  0x20   : > { %4744 = vmatprep.subr.bf16.mxu0 %v4743_v3  ;;  %v4755_v15 = vpack.c.bf16 %v5395_v13, %v5393_v12  ;;  %4225 = vmatprep.mubr.msk.f32.mxu1 %vm506_vm0, %v5398_v14  ;;  %v5409_v16 = vld [vmem:[%s5357_s26 + $0x18] sm:$0xff]  ;;  %v5412_v17 = vld [vmem:[%s5357_s26 + $0x20] sm:$0xff]  ;;  %v5415_v18 = vld [vmem:[%s5357_s26 + $0x68] sm:$0xff]  ;;  %s5155_s14 = scalar_lea.vmem %s5154_s21, 4096 }
  0x21   : > { %4746 = vmatpush3.bf16.msra.mxu0 %v4743_v3  ;;  %v5426_v21 = vld [vmem:[%s5357_s26 + $0x70] sm:$0xff]  ;;  %v5431_v22 = vld [vmem:[%s5357_s26 + $0x28] sm:$0xff]  ;;  %v5441_v25 = vld [vmem:[%s5357_s26 + $0x78] sm:$0xff] }
  0x22   : > { %4748 = vmatprep.subr.bf16.mxu0 %v4747_v6  ;;  %4756 = vmatprep.subr.bf16.mxu1 %v4755_v15  ;;  %v5434_v23 = vld [vmem:[%s5357_s26 + $0x30] sm:$0xff]  ;;  %v5448_v26 = vld [vmem:[%s5357_s26 + $0x38] sm:$0xff]  ;;  %v5451_v27 = vld [vmem:[%s5357_s26 + $0x40] sm:$0xff] }
  0x23   : > { %4758 = vmatpush3.bf16.msra.mxu1 %v4755_v15  ;;  %v5466_v30 = vld [vmem:[%s5357_s26 + $0x48] sm:$0xff]  ;;  %v5469_v31 = vld [vmem:[%s5357_s26 + $0x50] sm:$0xff]  ;;  %v5482_v35 = vld [vmem:[%s5357_s26 + $0x58] sm:$0xff] }
  0x24   : > { %4196 = vmatmul.mubr.msk.f32.vlgmr.msra.gmra.mrb[0].mxu0 %vm506_vm0, %v5386_v9  ;;  %v5524_v19 = vld [vmem:[%s5521_s17] sm:$0xff] }
  0x25   : > { %4198 = vmatprep.mubr.msk.f32.mxu0 %vm506_vm0, %v5389_v10  ;;  %4750 = vmatpush3.bf16.msra.mxu0 %v4747_v6 }
  0x26   : > { %4752 = vmatprep.subr.bf16.mxu0 %v4751_v11  ;;  %4226 = vmatmul.mubr.msk.f32.vlgmr.msra.gmra.mrb[0].mxu1 %vm506_vm0, %v5415_v18 }
  0x27   : > { %4228 = vmatprep.mubr.msk.f32.mxu1 %vm506_vm0, %v5426_v21 }
  0x28   : > { %4199 = vmatmul.mubr.msk.f32.gmra.mrb[2].mxu0 %vm506_vm0, %v5409_v16 }
  0x29   : > { %4205 = vmatprep.mubr.msk.f32.mxu0 %vm506_vm0, %v5412_v17 }
  0x2a   : > { %4229 = vmatmul.mubr.msk.f32.gmra.mrb[2].mxu1 %vm506_vm0, %v5441_v25 }
  0x2b   : > { %4295 = vmatprep.mubr.msk.f32.mxu1 %vm1078_vm1, %v5524_v19 }
  0x2c   : > { %4206 = vmatmul.mubr.msk.f32.vlgmr.msra.gmra.mrb[4].mxu0 %vm506_vm0, %v5431_v22 }
  0x2d   : > { %4208 = vmatprep.mubr.msk.f32.mxu0 %vm506_vm0, %v5434_v23  ;;  %4754 = vmatpush3.bf16.msra.mxu0 %v4751_v11 }
  0x2e   : > { %4760 = vmatprep.subr.bf16.mxu0 %v4759_v24 }
  0x30   : > { %4209 = vmatmul.mubr.msk.f32.gmra.mrb[6].mxu0 %vm506_vm0, %v5448_v26 }
  0x31   : > { %4215 = vmatprep.mubr.msk.f32.mxu0 %vm506_vm0, %v5451_v27 }
  0x34   : > { %4216 = vmatmul.mubr.msk.f32.vlgmr.msra.gmra.mrb[8].mxu0 %vm506_vm0, %v5466_v30 }
  0x35   : > { %4218 = vmatprep.mubr.msk.f32.mxu0 %vm506_vm0, %v5469_v31  ;;  %4762 = vmatpush3.bf16.msra.mxu0 %v4759_v24  ;;  %v490_v24 = vld [vmem:[%s6466_s6 + $0x8] sm:$0xff] }
  0x36   : > { %4764 = vmatprep.subr.bf16.mxu0 %v4763_v32  ;;  %v4823_v29 = vpack.c.bf16 %v490_v24, %v489_v20 }
  0x38   : > { %4219 = vmatmul.mubr.msk.f32.gmra.mrb[10].mxu0 %vm506_vm0, %v5482_v35 }
  0x39   : > { %4766 = vmatpush3.bf16.msra.mxu0 %v4763_v32  ;;  %v492_v32 = vld [vmem:[%s6466_s6 + $0x18] sm:$0xff] }
  0x3a   : > { %4768 = vmatprep.subr.bf16.mxu0 %v4767_v36  ;;  %v4827_v33 = vpack.c.bf16 %v492_v32, %v491_v28  ;;  %v453_v32 = vld [vmem:[%s5581_s29 + $0x28] sm:$0xff] }
  0x3d   : > { %4770 = vmatpush3.bf16.msra.mxu0 %v4767_v36  ;;  %v494_v36 = vld [vmem:[%s6466_s6 + $0x28] sm:$0xff] }
  0x3e   : > { %4772 = vmatprep.subr.bf16.mxu0 %v4771_v39  ;;  %v4831_v37 = vpack.c.bf16 %v494_v36, %v493_v34 }
  0x41   : > { %4774 = vmatpush3.bf16.msra.mxu0 %v4771_v39  ;;  %v496_v39 = vld [vmem:[%s6466_s6 + $0x38] sm:$0xff] }
  0x42   : > { %4776 = vmatprep.subr.bf16.mxu0 %v4775_v42  ;;  %v4835_v40 = vpack.c.bf16 %v496_v39, %v495_v38  ;;  %v452_v38 = vld [vmem:[%s5581_s29 + $0x20] sm:$0xff] }
  0x45   : > { %4778 = vmatpush3.bf16.msra.mxu0 %v4775_v42  ;;  %v498_v42 = vld [vmem:[%s6466_s6 + $0x48] sm:$0xff] }
  0x46   : > { %4780 = vmatprep.subr.bf16.mxu0 %v4779_v45  ;;  %v4839_v43 = vpack.c.bf16 %v498_v42, %v497_v41 }
  0x49   : > { %4782 = vmatpush3.bf16.msra.mxu0 %v4779_v45  ;;  %v500_v45 = vld [vmem:[%s6466_s6 + $0x58] sm:$0xff] }
  0x4a   : > { %4784 = vmatprep.subr.bf16.mxu0 %v4783_v48  ;;  %v4843_v46 = vpack.c.bf16 %v500_v45, %v499_v44  ;;  %v455_v44 = vld [vmem:[%s5581_s29 + $0x38] sm:$0xff] }
  0x4d   : > { %4786 = vmatpush3.bf16.msra.mxu0 %v4783_v48  ;;  %v502_v48 = vld [vmem:[%s6466_s6 + $0x68] sm:$0xff] }
  0x4e   : > { %4788 = vmatprep.subr.bf16.mxu0 %v4787_v51  ;;  %v4847_v49 = vpack.c.bf16 %v502_v48, %v501_v47 }
  0x51   : > { %4790 = vmatpush3.bf16.msra.mxu0 %v4787_v51  ;;  %v504_v51 = vld [vmem:[%s6466_s6 + $0x78] sm:$0xff] }
  0x52   : > { %4824 = vmatprep.subr.bf16.mxu0 %v4823_v29 }
  0xf7   : > { %v4197_v52 = vpop.f32.mrb[0].mxu0 }
  0xf8   : > { %v585_v53 = vpop.f32.mrb[1].mxu0 }
  0xf9   : > { %4263 = vmatprep.mubr.f32.mxu0 %v585_v53  ;;  %v4227_v56 = vpop.f32.mrb[0].mxu1  ;;  %v5586_v53 = vld [vmem:[%s6465_s5] ss:$0 sm:$0xff] }
  0xfa   : > { %4264 = vmatmul.mubr.f32.vlgmr.msra.gmra.mrb[12].mxu0 %v4197_v52  ;;  %v876_v57 = vpop.f32.mrb[1].mxu1  ;;  %v4851_v52 = vpack.c.bf16 %v504_v51, %v503_v50 }
  0xfb   : > { %v4200_v54 = vpop.f32.mrb[2].mxu0  ;;  %4826 = vmatpush3.bf16.msra.mxu0 %v4823_v29 }
  0xfc   : > { %v595_v55 = vpop.f32.mrb[3].mxu0  ;;  %4828 = vmatprep.subr.bf16.mxu0 %v4827_v33 }
  0xfd   : > { %4266 = vmatprep.mubr.f32.mxu0 %v595_v55  ;;  %v4230_v60 = vpop.f32.mrb[2].mxu1 }
  0xfe   : > { %4267 = vmatmul.mubr.f32.gmra.mrb[14].mxu0 %v4200_v54  ;;  %v886_v61 = vpop.f32.mrb[3].mxu1  ;;  %v449_v54 = vld [vmem:[%s5581_s29 + $0x8] sm:$0xff] }
  0xff   : > { %v4207_v58 = vpop.f32.mrb[4].mxu0  ;;  %4830 = vmatpush3.bf16.msra.mxu0 %v4827_v33 }
 0x100   : > { %v682_v59 = vpop.f32.mrb[5].mxu0  ;;  %4832 = vmatprep.subr.bf16.mxu0 %v4831_v37 }
 0x101   : > { %4269 = vmatprep.mubr.f32.mxu0 %v682_v59 }
 0x102   : > { %4270 = vmatmul.mubr.f32.gmra.mrb[16].mxu0 %v4207_v58 }
 0x103   : > { %v4210_v62 = vpop.f32.mrb[6].mxu0  ;;  %4834 = vmatpush3.bf16.msra.mxu0 %v4831_v37 }
 0x104   : > { %v692_v63 = vpop.f32.mrb[7].mxu0  ;;  %4836 = vmatprep.subr.bf16.mxu0 %v4835_v40 }
 0x105   : > { %4272 = vmatprep.mubr.f32.mxu0 %v692_v63 }
 0x106   : > { %4273 = vmatmul.mubr.f32.gmra.mrb[18].mxu0 %v4210_v62  ;;  %v451_v62 = vld [vmem:[%s5581_s29 + $0x18] sm:$0xff] }
 0x107   : > { %v4217_v3 = vpop.f32.mrb[8].mxu0  ;;  %4838 = vmatpush3.bf16.msra.mxu0 %v4835_v40 }
 0x108   : > { %v779_v6 = vpop.f32.mrb[9].mxu0  ;;  %4840 = vmatprep.subr.bf16.mxu0 %v4839_v43 }
 0x109   : > { %4275 = vmatprep.mubr.f32.mxu0 %v779_v6 }
 0x10a   : > { %4276 = vmatmul.mubr.f32.gmra.mrb[20].mxu0 %v4217_v3 }
 0x10b   : > { %v4220_v11 = vpop.f32.mrb[10].mxu0  ;;  %4842 = vmatpush3.bf16.msra.mxu0 %v4839_v43 }
 0x10c   : > { %v789_v15 = vpop.f32.mrb[11].mxu0  ;;  %4844 = vmatprep.subr.bf16.mxu0 %v4843_v46 }
 0x10d   : > { %4278 = vmatprep.mubr.f32.mxu0 %v789_v15 }
 0x10e   : > { %4279 = vmatmul.mubr.f32.gmra.mrb[22].mxu0 %v4220_v11  ;;  %v450_v11 = vld [vmem:[%s5581_s29 + $0x10] sm:$0xff] }
 0x10f   : > { %4281 = vmatprep.mubr.f32.mxu0 %v876_v57  ;;  %4846 = vmatpush3.bf16.msra.mxu0 %v4843_v46  ;;  %v448_v57 = vld [vmem:[%s5581_s29] sm:$0xff] }
 0x110   : > { %4848 = vmatprep.subr.bf16.mxu0 %v4847_v49 }
 0x112   : > { %4282 = vmatmul.mubr.f32.gmra.mrb[24].mxu0 %v4227_v56 }
 0x113   : > { %4284 = vmatprep.mubr.f32.mxu0 %v886_v61  ;;  %4850 = vmatpush3.bf16.msra.mxu0 %v4847_v49  ;;  %v454_v49 = vld [vmem:[%s5581_s29 + $0x30] sm:$0xff] }
 0x114   : > { %4852 = vmatprep.subr.bf16.mxu0 %v4851_v52 }
 0x116   : > { %4285 = vmatmul.mubr.f32.gmra.mrb[26].mxu0 %v4230_v60 }
 0x117   : > { %4854 = vmatpush3.bf16.msra.mxu0 %v4851_v52 }
 0x1cd   : > { %v4265_v55 = vpop.f32.mrb[12].mxu0 }
 0x1ce   : > { %v973_v56 = vadd.f32 %v4265_v55, %v5586_v53  ;;  %v967_v58 = vpop.f32.mrb[13].mxu0  ;;  %v5633_v55 = vld [vmem:[%s5521_s17 + $0x8] sm:$0xff] }
 0x1cf   : > { %v968_v59 = vadd.f32 %v5586_v53, %v967_v58 }
 0x1d0   : > { %v5592_v60 = vadd.f32 %v973_v56, %v449_v54 }
 0x1d1   : > { %v5594_v61 = vadd.f32 %v968_v59, %v448_v57  ;;  %v4268_v63 = vpop.f32.mrb[14].mxu0  ;;  %v457_v57 = vld [vmem:[%s5581_s29 + $0x48] sm:$0xff] }
 0x1d2   : > { %v1063_v3 = vmax.f32 %v5592_v60, 0.0  ;;  %v983_v6 = vadd.f32 %v4268_v63, %v5586_v53  ;;  %v977_v15 = vpop.f32.mrb[15].mxu0 }
 0x1d3   : > { %v1062_v20 = vmax.f32 %v5594_v61, 0.0  ;;  %v978_v24 = vadd.f32 %v5586_v53, %v977_v15 }
 0x1d4   : > { %v5602_v28 = vadd.f32 %v983_v6, %v451_v62  ;;  %v5643_v62 = vld [vmem:[%s5521_s17 + $0x10] sm:$0xff] }
 0x1d5   : > { %v5604_v29 = vadd.f32 %v978_v24, %v450_v11  ;;  %v4271_v33 = vpop.f32.mrb[16].mxu0  ;;  %v4791_v34 = vpack.c.bf16 %v1063_v3, %v1062_v20  ;;  %v456_v11 = vld [vmem:[%s5581_s29 + $0x40] sm:$0xff] }
 0x1d6   : > { %v1065_v36 = vmax.f32 %v5602_v28, 0.0  ;;  %v993_v37 = vadd.f32 %v4271_v33, %v5586_v53  ;;  %v987_v39 = vpop.f32.mrb[17].mxu0 }
 0x1d7   : > { %v1064_v40 = vmax.f32 %v5604_v29, 0.0  ;;  %v988_v41 = vadd.f32 %v5586_v53, %v987_v39  ;;  %4792 = vmatprep.subr.bf16.mxu1 %v4791_v34 }
 0x1d8   : > { %v5616_v42 = vadd.f32 %v993_v37, %v453_v32  ;;  %4794 = vmatpush3.bf16.msra.mxu1 %v4791_v34  ;;  %v459_v37 = vld [vmem:[%s5581_s29 + $0x58] sm:$0xff] }
 0x1d9   : > { %v5618_v43 = vadd.f32 %v988_v41, %v452_v38  ;;  %v4274_v45 = vpop.f32.mrb[18].mxu0  ;;  %v4795_v46 = vpack.c.bf16 %v1065_v36, %v1064_v40 }
 0x1da   : > { %v1067_v47 = vmax.f32 %v5616_v42, 0.0  ;;  %v1003_v48 = vadd.f32 %v4274_v45, %v5586_v53  ;;  %v997_v50 = vpop.f32.mrb[19].mxu0  ;;  %v458_v45 = vld [vmem:[%s5581_s29 + $0x50] sm:$0xff] }
 0x1db   : > { %v6481_v51 = vmax.f32 %v5618_v43, 0.0  ;;  %v998_v52 = vadd.f32 %v5586_v53, %v997_v50  ;;  %4796 = vmatprep.subr.bf16.mxu1 %v4795_v46 }
 0x1dc   : > { %v5630_v54 = vadd.f32 %v1003_v48, %v455_v44  ;;  %4798 = vmatpush3.bf16.msra.mxu1 %v4795_v46 }
 0x1dd   : > { %v5635_v56 = vadd.f32 %v998_v52, %v454_v49  ;;  %v4277_v58 = vpop.f32.mrb[20].mxu0  ;;  %v4799_v59 = vpack.c.bf16 %v1067_v47, %v6481_v51  ;;  %v5671_v52 = vld [vmem:[%s5521_s17 + $0x18] sm:$0xff] }
 0x1de   : > { %v6474_v63 = vmax.f32 %v5630_v54, 0.0  ;;  %v1013_v6 = vadd.f32 %v4277_v58, %v5586_v53  ;;  %v1007_v15 = vpop.f32.mrb[21].mxu0  ;;  %v461_v58 = vld [vmem:[%s5581_s29 + $0x68] sm:$0xff] }
 0x1df   : > { %v6473_v24 = vmax.f32 %v5635_v56, 0.0  ;;  %v1008_v32 = vadd.f32 %v5586_v53, %v1007_v15  ;;  %4296 = vmatmul.mubr.msk.f32.vlgmr.msra.gmra.mrb[4].mxu1 %vm1078_vm1, %v5633_v55  ;;  %4800 = vmatprep.subr.bf16.mxu1 %v4799_v59 }
 0x1e0   : > { %v5652_v33 = vadd.f32 %v1013_v6, %v457_v57  ;;  %4802 = vmatpush3.bf16.msra.mxu1 %v4799_v59  ;;  %4306 = vmatprep.mubr.msk.f32.mxu1 %vm1078_vm1, %v5643_v62 }
 0x1e1   : > { %v5656_v34 = vadd.f32 %v1008_v32, %v456_v11  ;;  %v4280_v38 = vpop.f32.mrb[22].mxu0  ;;  %v4803_v39 = vpack.c.bf16 %v6474_v63, %v6473_v24  ;;  %v5681_v11 = vld [vmem:[%s5521_s17 + $0x20] sm:$0xff] }
 0x1e2   : > { %v6472_v41 = vmax.f32 %v5652_v33, 0.0  ;;  %v1023_v44 = vadd.f32 %v4280_v38, %v5586_v53  ;;  %v1017_v46 = vpop.f32.mrb[23].mxu0 }
 0x1e3   : > { %v6471_v48 = vmax.f32 %v5656_v34, 0.0  ;;  %v1018_v49 = vadd.f32 %v5586_v53, %v1017_v46  ;;  %4804 = vmatprep.subr.bf16.mxu1 %v4803_v39 }
 0x1e4   : > { %v5668_v50 = vadd.f32 %v1023_v44, %v459_v37  ;;  %4806 = vmatpush3.bf16.msra.mxu1 %v4803_v39  ;;  %v460_v37 = vld [vmem:[%s5581_s29 + $0x60] sm:$0xff] }
 0x1e5   : > { %v5673_v57 = vadd.f32 %v1018_v49, %v458_v45  ;;  %v4283_v59 = vpop.f32.mrb[24].mxu0  ;;  %v4807_v6 = vpack.c.bf16 %v6472_v41, %v6471_v48  ;;  %v463_v49 = vld [vmem:[%s5581_s29 + $0x78] sm:$0xff] }
 0x1e6   : > { %v6476_v15 = vmax.f32 %v5668_v50, 0.0  ;;  %v1033_v32 = vadd.f32 %v4283_v59, %v5586_v53  ;;  %v1027_v38 = vpop.f32.mrb[25].mxu0 }
 0x1e7   : > { %v6475_v39 = vmax.f32 %v5673_v57, 0.0  ;;  %v1028_v44 = vadd.f32 %v5586_v53, %v1027_v38  ;;  %4307 = vmatmul.mubr.msk.f32.vlgmr.msra.gmra.mrb[6].mxu1 %vm1078_vm1, %v5671_v52  ;;  %4808 = vmatprep.subr.bf16.mxu1 %v4807_v6 }
 0x1e8   : > { %v5690_v45 = vadd.f32 %v1033_v32, %v461_v58  ;;  %4810 = vmatpush3.bf16.msra.mxu1 %v4807_v6  ;;  %4317 = vmatprep.mubr.msk.f32.mxu1 %vm1078_vm1, %v5681_v11  ;;  %v462_v32 = vld [vmem:[%s5581_s29 + $0x70] sm:$0xff] }
 0x1e9   : > { %v5694_v46 = vadd.f32 %v1028_v44, %v460_v37  ;;  %v4286_v59 = vpop.f32.mrb[26].mxu0  ;;  %v4811_v38 = vpack.c.bf16 %v6476_v15, %v6475_v39  ;;  %v5709_v44 = vld [vmem:[%s5521_s17 + $0x28] sm:$0xff]  ;;  %v5718_v39 = vld [vmem:[%s5521_s17 + $0x30] sm:$0xff] }
 0x1ea   : > { %v6480_v48 = vmax.f32 %v5690_v45, 0.0  ;;  %v1043_v58 = vadd.f32 %v4286_v59, %v5586_v53  ;;  %v1037_v41 = vpop.f32.mrb[27].mxu0 }
 0x1eb   : > { %v6479_v6 = vmax.f32 %v5694_v46, 0.0  ;;  %v1038_v24 = vadd.f32 %v5586_v53, %v1037_v41  ;;  %4812 = vmatprep.subr.bf16.mxu1 %v4811_v38  ;;  %v5731_v41 = vld [vmem:[%s5521_s17 + $0x38] sm:$0xff] }
 0x1ec   : > { %v5706_v37 = vadd.f32 %v1043_v58, %v463_v49  ;;  %4814 = vmatpush3.bf16.msra.mxu1 %v4811_v38 }
 0x1ed   : > { %v5711_v63 = vadd.f32 %v1038_v24, %v462_v32  ;;  %v4815_v59 = vpack.c.bf16 %v6480_v48, %v6479_v6 }
 0x1ee   : > { %v6478_v15 = vmax.f32 %v5706_v37, 0.0 }
 0x1ef   : > { %v6477_v53 = vmax.f32 %v5711_v63, 0.0  ;;  %4318 = vmatmul.mubr.msk.f32.vlgmr.msra.gmra.mrb[8].mxu1 %vm1078_vm1, %v5709_v44  ;;  %4816 = vmatprep.subr.bf16.mxu1 %v4815_v59 }
 0x1f0   : > { %4818 = vmatpush3.bf16.msra.mxu1 %v4815_v59  ;;  %4328 = vmatprep.mubr.msk.f32.mxu1 %vm1078_vm1, %v5718_v39 }
 0x1f1   : > { %v4819_v24 = vpack.c.bf16 %v6478_v15, %v6477_v53 }
 0x1f3   : > { %4820 = vmatprep.subr.bf16.mxu1 %v4819_v24 }
 0x1f4   : > { %4822 = vmatpush3.bf16.msra.mxu1 %v4819_v24 }
 0x1f7   : > { %4329 = vmatmul.mubr.msk.f32.vlgmr.msra.gmra.mrb[10].mxu1 %vm1078_vm1, %v5731_v41 }
 0x1f8   : > { %4389 = vmatprep.mubr.msk.f32.mxu1 %vm506_vm0, %v5412_v17  ;;  %v3740_v17 = vld [vmem:[%s6467_s7] ss:$0 sm:$0xff] }
 0x2b2   : > { %v4297_v49 = vpop.f32.mrb[4].mxu1 }
 0x2b3   : > { %v1151_v38 = vpop.f32.mrb[5].mxu1 }
 0x2b4   : > { %4363 = vmatprep.mubr.f32.mxu0 %v1151_v38 }
 0x2b5   : > { %4364 = vmatmul.mubr.f32.vlgmr.msra.gmra.mrb[28].mxu0 %v4297_v49 }
 0x2ba   : > { %v4308_v58 = vpop.f32.mrb[6].mxu1 }
 0x2bb   : > { %v1232_v32 = vpop.f32.mrb[7].mxu1 }
 0x2bc   : > { %4366 = vmatprep.mubr.f32.mxu0 %v1232_v32 }
 0x2bd   : > { %4367 = vmatmul.mubr.f32.gmra.mrb[30].mxu0 %v4308_v58 }
 0x2c2   : > { %v4319_v59 = vpop.f32.mrb[8].mxu1 }
 0x2c3   : > { %v1313_v53 = vpop.f32.mrb[9].mxu1 }
 0x2c4   : > { %4369 = vmatprep.mubr.f32.mxu0 %v1313_v53 }
 0x2c5   : > { %4370 = vmatmul.mubr.f32.gmra.mrb[32].mxu0 %v4319_v59 }
 0x2ca   : > { %v4330_v24 = vpop.f32.mrb[10].mxu1 }
 0x2cb   : > { %v1394_v15 = vpop.f32.mrb[11].mxu1 }
 0x2cc   : > { %4372 = vmatprep.mubr.f32.mxu0 %v1394_v15 }
 0x2cd   : > { %4373 = vmatmul.mubr.f32.gmra.mrb[34].mxu0 %v4330_v24 }
 0x2ce   : > { %4379 = vmatprep.mubr.msk.f32.mxu0 %vm506_vm0, %v5365_v0 }
 0x388   : > { %v4365_v49 = vpop.f32.mrb[28].mxu0 }
 0x389   : > { %v1481_v38 = vadd.f32 %v4365_v49, %v3740_v17  ;;  %v1475_v6 = vpop.f32.mrb[29].mxu0 }
 0x38a   : > { %v1476_v32 = vadd.f32 %v3740_v17, %v1475_v6 }
 0x38b   : > { %v5743_v58 = vadd.f32 %v1481_v38, %v5369_v2 }
 0x38c   : > { %v5746_v53 = vadd.f32 %v1476_v32, %v5367_v1 }
 0x38d   : > { %v1523_v15 = vmax.f32 %v5743_v58, 0.0 }
 0x38e   : > { %v1522_v59 = vmax.f32 %v5746_v53, 0.0 }
 0x390   : > { %v4368_v24 = vpop.f32.mrb[30].mxu0  ;;  %v4855_v0 = vpack.c.bf16 %v1523_v15, %v1522_v59 }
 0x391   : > { %v1491_v48 = vadd.f32 %v4368_v24, %v3740_v17  ;;  %v1485_v49 = vpop.f32.mrb[31].mxu0 }
 0x392   : > { %v1486_v51 = vadd.f32 %v3740_v17, %v1485_v49  ;;  %4856 = vmatprep.subr.bf16.mxu0 %v4855_v0 }
 0x393   : > { %v5755_v2 = vadd.f32 %v1491_v48, %v5377_v5  ;;  %4858 = vmatpush3.bf16.msra.mxu0 %v4855_v0 }
 0x394   : > { %v5758_v1 = vadd.f32 %v1486_v51, %v5375_v4 }
 0x395   : > { %v1525_v6 = vmax.f32 %v5755_v2, 0.0 }
 0x396   : > { %v1524_v38 = vmax.f32 %v5758_v1, 0.0  ;;  %4380 = vmatmul.mubr.msk.f32.vlgmr.msra.gmra.mrb[36].mxu0 %vm506_vm0, %v5386_v9 }
 0x397   : > { %4382 = vmatprep.mubr.msk.f32.mxu0 %vm506_vm0, %v5389_v10 }
 0x398   : > { %v4371_v32 = vpop.f32.mrb[32].mxu0  ;;  %v4859_v5 = vpack.c.bf16 %v1525_v6, %v1524_v38 }
 0x399   : > { %v1501_v48 = vadd.f32 %v4371_v32, %v3740_v17  ;;  %v1495_v24 = vpop.f32.mrb[33].mxu0 }
 0x39a   : > { %v1496_v4 = vadd.f32 %v3740_v17, %v1495_v24  ;;  %4383 = vmatmul.mubr.msk.f32.gmra.mrb[38].mxu0 %vm506_vm0, %v5409_v16  ;;  %4860 = vmatprep.subr.bf16.mxu1 %v4859_v5  ;;  %v3746_v24 = vld [vmem:[%s6464_s4 + $0xa8] sm:$0xff] }
 0x39b   : > { %v5773_v51 = vadd.f32 %v1501_v48, %v5383_v8  ;;  %4862 = vmatpush3.bf16.msra.mxu1 %v4859_v5  ;;  %4479 = vmatprep.mubr.msk.f32.mxu0 %vm1078_vm1, %v5524_v19  ;;  %v3743_v5 = vld [vmem:[%s6464_s4 + $0x90] sm:$0xff]  ;;  %v3744_v48 = vld [vmem:[%s6464_s4 + $0x98] sm:$0xff] }
 0x39c   : > { %v5778_v9 = vadd.f32 %v1496_v4, %v5381_v7  ;;  %v3748_v4 = vld [vmem:[%s6464_s4 + $0xb8] sm:$0xff] }
 0x39d   : > { %v1527_v10 = vmax.f32 %v5773_v51, 0.0  ;;  %v5131_v51 = vld [vmem:[%s5357_s26 + $0x30] sm:$0xff] }
 0x39e   : > { %v1526_v0 = vmax.f32 %v5778_v9, 0.0  ;;  %4390 = vmatmul.mubr.msk.f32.vlgmr.msra.gmra.mrb[12].mxu1 %vm506_vm0, %v5431_v22 }
 0x39f   : > { %4392 = vmatprep.mubr.msk.f32.mxu1 %vm506_vm0, %v5434_v23 }
 0x3a0   : > { %v4374_v16 = vpop.f32.mrb[34].mxu0  ;;  %v4863_v8 = vpack.c.bf16 %v1527_v10, %v1526_v0 }
 0x3a1   : > { %v1511_v19 = vadd.f32 %v4374_v16, %v3740_v17  ;;  %v1505_v49 = vpop.f32.mrb[35].mxu0  ;;  %v3750_v16 = vld [vmem:[%s6464_s4 + $0xc8] sm:$0xff] }
 0x3a2   : > { %v1506_v7 = vadd.f32 %v3740_v17, %v1505_v49  ;;  %4393 = vmatmul.mubr.msk.f32.gmra.mrb[14].mxu1 %vm506_vm0, %v5448_v26  ;;  %4864 = vmatprep.subr.bf16.mxu1 %v4863_v8  ;;  %v3741_v17 = vld [vmem:[%s6464_s4 + $0x80] sm:$0xff]  ;;  %v3742_v26 = vld [vmem:[%s6464_s4 + $0x88] sm:$0xff] }
 0x3a3   : > { %v5793_v32 = vadd.f32 %v1511_v19, %v5395_v13  ;;  %4866 = vmatpush3.bf16.msra.mxu1 %v4863_v8  ;;  %4399 = vmatprep.mubr.msk.f32.mxu1 %vm506_vm0, %v5451_v27  ;;  %v4871_v27 = vpack.c.bf16 %v3742_v26, %v3741_v17  ;;  %v3751_v19 = vld [vmem:[%s6464_s4 + $0xd0] sm:$0xff]  ;;  %v3754_v17 = vld [vmem:[%s6464_s4 + $0xe8] sm:$0xff] }
 0x3a4   : > { %v5798_v22 = vadd.f32 %v1506_v7, %v5393_v12  ;;  %v3753_v7 = vld [vmem:[%s6464_s4 + $0xe0] sm:$0xff] }
 0x3a5   : > { %v1529_v23 = vmax.f32 %v5793_v32, 0.0  ;;  %v4895_v26 = vpack.c.bf16 %v3754_v17, %v3753_v7  ;;  %v5135_v32 = vld [vmem:[%s5357_s26 + $0x50] sm:$0xff] }
 0x3a6   : > { %v1528_v13 = vmax.f32 %v5798_v22, 0.0  ;;  %4400 = vmatmul.mubr.msk.f32.vlgmr.msra.gmra.mrb[16].mxu1 %vm506_vm0, %v5466_v30  ;;  %v4875_v30 = vpack.c.bf16 %v3744_v48, %v3743_v5 }
 0x3a7   : > { %4402 = vmatprep.mubr.msk.f32.mxu1 %vm506_vm0, %v5469_v31  ;;  %v3745_v31 = vld [vmem:[%s6464_s4 + $0xa0] sm:$0xff] }
 0x3a8   : > { %v4867_v12 = vpack.c.bf16 %v1529_v23, %v1528_v13 }
 0x3aa   : > { %4403 = vmatmul.mubr.msk.f32.gmra.mrb[18].mxu1 %vm506_vm0, %v5482_v35  ;;  %4868 = vmatprep.subr.bf16.mxu1 %v4867_v12  ;;  %v4879_v35 = vpack.c.bf16 %v3746_v24, %v3745_v31 }
 0x3ab   : > { %4870 = vmatpush3.bf16.msra.mxu1 %v4867_v12  ;;  %4409 = vmatprep.mubr.msk.f32.mxu1 %vm506_vm0, %v5398_v14  ;;  %v3747_v14 = vld [vmem:[%s6464_s4 + $0xb0] sm:$0xff] }
 0x3ac   : > { %4872 = vmatprep.subr.bf16.mxu1 %v4871_v27  ;;  %v3755_v12 = vld [vmem:[%s6464_s4 + $0xf0] sm:$0xff] }
 0x3ae   : > { %4410 = vmatmul.mubr.msk.f32.vlgmr.msra.gmra.mrb[20].mxu1 %vm506_vm0, %v5415_v18  ;;  %v4883_v18 = vpack.c.bf16 %v3748_v4, %v3747_v14 }
 0x3af   : > { %4412 = vmatprep.mubr.msk.f32.mxu1 %vm506_vm0, %v5426_v21  ;;  %4874 = vmatpush3.bf16.msra.mxu1 %v4871_v27  ;;  %v3749_v21 = vld [vmem:[%s6464_s4 + $0xc0] sm:$0xff]  ;;  %v3756_v27 = vld [vmem:[%s6464_s4 + $0xf8] sm:$0xff] }
 0x3b0   : > { %4876 = vmatprep.subr.bf16.mxu1 %v4875_v30  ;;  %v4887_v8 = vpack.c.bf16 %v3750_v16, %v3749_v21  ;;  %v4899_v5 = vpack.c.bf16 %v3756_v27, %v3755_v12  ;;  %v3759_v12 = vld [vmem:[%s6466_s6 + $0x88] sm:$0xff]  ;;  %v3760_v27 = vld [vmem:[%s6466_s6 + $0x90] sm:$0xff] }
 0x3b2   : > { %4413 = vmatmul.mubr.msk.f32.gmra.mrb[22].mxu1 %vm506_vm0, %v5441_v25  ;;  %v3752_v25 = vld [vmem:[%s6464_s4 + $0xd8] sm:$0xff] }
 0x3b3   : > { %4878 = vmatpush3.bf16.msra.mxu1 %v4875_v30  ;;  %v4891_v49 = vpack.c.bf16 %v3752_v25, %v3751_v19 }
 0x3b4   : > { %4880 = vmatprep.subr.bf16.mxu1 %v4879_v35 }
 0x3b7   : > { %4882 = vmatpush3.bf16.msra.mxu1 %v4879_v35 }
 0x3b8   : > { %4884 = vmatprep.subr.bf16.mxu1 %v4883_v18 }
 0x3bb   : > { %4886 = vmatpush3.bf16.msra.mxu1 %v4883_v18 }
 0x3bc   : > { %4888 = vmatprep.subr.bf16.mxu1 %v4887_v8 }
 0x3bf   : > { %4890 = vmatpush3.bf16.msra.mxu1 %v4887_v8 }
 0x3c0   : > { %4892 = vmatprep.subr.bf16.mxu1 %v4891_v49 }
 0x3c3   : > { %4894 = vmatpush3.bf16.msra.mxu1 %v4891_v49 }
 0x3c4   : > { %4896 = vmatprep.subr.bf16.mxu1 %v4895_v26 }
 0x3c7   : > { %4898 = vmatpush3.bf16.msra.mxu1 %v4895_v26  ;;  %v3758_v26 = vld [vmem:[%s6466_s6 + $0x80] sm:$0xff] }
 0x3c8   : > { %4900 = vmatprep.subr.bf16.mxu1 %v4899_v5 }
 0x3cb   : > { %4902 = vmatpush3.bf16.msra.mxu1 %v4899_v5  ;;  %v4935_v5 = vpack.c.bf16 %v3759_v12, %v3758_v26  ;;  %v3772_v12 = vld [vmem:[%s6466_s6 + $0xf0] sm:$0xff] }
 0x3cd   : > { %4936 = vmatprep.subr.bf16.mxu1 %v4935_v5 }
 0x469   : > { %v4381_v48 = vpop.f32.mrb[36].mxu0 }
 0x46a   : > { %v1634_v30 = vpop.f32.mrb[37].mxu0 }
 0x46b   : > { %4447 = vmatprep.mubr.f32.mxu1 %v1634_v30 }
 0x46c   : > { %4448 = vmatmul.mubr.f32.vlgmr.msra.gmra.mrb[24].mxu1 %v4381_v48  ;;  %v3761_v48 = vld [vmem:[%s6466_s6 + $0x98] sm:$0xff] }
 0x46d   : > { %v4384_v31 = vpop.f32.mrb[38].mxu0  ;;  %v4939_v30 = vpack.c.bf16 %v3761_v48, %v3760_v27  ;;  %4938 = vmatpush3.bf16.msra.mxu1 %v4935_v5  ;;  %v3773_v27 = vld [vmem:[%s6466_s6 + $0xf8] sm:$0xff]  ;;  %v5919_v48 = vld [vmem:[%s6465_s5 + $0x1] ss:$0 sm:$0xff] }
 0x46e   : > { %v1644_v24 = vpop.f32.mrb[39].mxu0  ;;  %v4963_v5 = vpack.c.bf16 %v3773_v27, %v3772_v12 }
 0x46f   : > { %4450 = vmatprep.mubr.f32.mxu1 %v1644_v24  ;;  %v3763_v24 = vld [vmem:[%s6466_s6 + $0xa8] sm:$0xff]  ;;  %4940 = vmatprep.subr.bf16.mxu1 %v4939_v30 }
 0x470   : > { %4451 = vmatmul.mubr.f32.gmra.mrb[26].mxu1 %v4384_v31  ;;  %v3762_v31 = vld [vmem:[%s6466_s6 + $0xa0] sm:$0xff] }
 0x471   : > { %v4391_v35 = vpop.f32.mrb[12].mxu1  ;;  %4942 = vmatpush3.bf16.msra.mxu1 %v4939_v30 }
 0x472   : > { %v1719_v14 = vpop.f32.mrb[13].mxu1 }
 0x473   : > { %4453 = vmatprep.mubr.f32.mxu1 %v1719_v14  ;;  %v3764_v14 = vld [vmem:[%s6466_s6 + $0xb0] sm:$0xff] }
 0x474   : > { %4454 = vmatmul.mubr.f32.gmra.mrb[28].mxu1 %v4391_v35  ;;  %v4943_v35 = vpack.c.bf16 %v3763_v24, %v3762_v31 }
 0x475   : > { %v4394_v4 = vpop.f32.mrb[14].mxu1 }
 0x476   : > { %v1729_v18 = vpop.f32.mrb[15].mxu1  ;;  %4944 = vmatprep.subr.bf16.mxu1 %v4943_v35 }
 0x477   : > { %4456 = vmatprep.mubr.f32.mxu1 %v1729_v18  ;;  %4946 = vmatpush3.bf16.msra.mxu1 %v4943_v35 }
 0x478   : > { %4457 = vmatmul.mubr.f32.gmra.mrb[30].mxu1 %v4394_v4  ;;  %v3765_v4 = vld [vmem:[%s6466_s6 + $0xb8] sm:$0xff] }
 0x479   : > { %v4401_v21 = vpop.f32.mrb[16].mxu1  ;;  %v4947_v18 = vpack.c.bf16 %v3765_v4, %v3764_v14 }
 0x47a   : > { %v1804_v16 = vpop.f32.mrb[17].mxu1 }
 0x47b   : > { %4459 = vmatprep.mubr.f32.mxu1 %v1804_v16  ;;  %v3767_v16 = vld [vmem:[%s6466_s6 + $0xc8] sm:$0xff]  ;;  %4948 = vmatprep.subr.bf16.mxu1 %v4947_v18 }
 0x47c   : > { %4460 = vmatmul.mubr.f32.gmra.mrb[32].mxu1 %v4401_v21  ;;  %v3766_v21 = vld [vmem:[%s6466_s6 + $0xc0] sm:$0xff] }
 0x47d   : > { %v4404_v8 = vpop.f32.mrb[18].mxu1  ;;  %4950 = vmatpush3.bf16.msra.mxu1 %v4947_v18 }
 0x47e   : > { %v1814_v19 = vpop.f32.mrb[19].mxu1 }
 0x47f   : > { %4462 = vmatprep.mubr.f32.mxu1 %v1814_v19  ;;  %v3768_v19 = vld [vmem:[%s6466_s6 + $0xd0] sm:$0xff] }
 0x480   : > { %4463 = vmatmul.mubr.f32.gmra.mrb[34].mxu1 %v4404_v8  ;;  %v4951_v8 = vpack.c.bf16 %v3767_v16, %v3766_v21 }
 0x481   : > { %v4411_v25 = vpop.f32.mrb[20].mxu1 }
 0x482   : > { %v1889_v49 = vpop.f32.mrb[21].mxu1  ;;  %4952 = vmatprep.subr.bf16.mxu1 %v4951_v8 }
 0x483   : > { %4465 = vmatprep.mubr.f32.mxu1 %v1889_v49  ;;  %4954 = vmatpush3.bf16.msra.mxu1 %v4951_v8 }
 0x484   : > { %4466 = vmatmul.mubr.f32.gmra.mrb[36].mxu1 %v4411_v25  ;;  %v3769_v25 = vld [vmem:[%s6466_s6 + $0xd8] sm:$0xff] }
 0x485   : > { %v4414_v7 = vpop.f32.mrb[22].mxu1  ;;  %v4955_v49 = vpack.c.bf16 %v3769_v25, %v3768_v19 }
 0x486   : > { %v1899_v17 = vpop.f32.mrb[23].mxu1 }
 0x487   : > { %4468 = vmatprep.mubr.f32.mxu1 %v1899_v17  ;;  %v3771_v17 = vld [vmem:[%s6466_s6 + $0xe8] sm:$0xff]  ;;  %4956 = vmatprep.subr.bf16.mxu1 %v4955_v49 }
 0x488   : > { %4469 = vmatmul.mubr.f32.gmra.mrb[38].mxu1 %v4414_v7  ;;  %v3770_v7 = vld [vmem:[%s6466_s6 + $0xe0] sm:$0xff] }
 0x489   : > { %v4959_v26 = vpack.c.bf16 %v3771_v17, %v3770_v7  ;;  %4958 = vmatpush3.bf16.msra.mxu1 %v4955_v49 }
 0x48b   : > { %4960 = vmatprep.subr.bf16.mxu1 %v4959_v26 }
 0x48d   : > { %4962 = vmatpush3.bf16.msra.mxu1 %v4959_v26 }
 0x48e   : > { %4964 = vmatprep.subr.bf16.mxu1 %v4963_v5 }
 0x491   : > { %4966 = vmatpush3.bf16.msra.mxu1 %v4963_v5 }
 0x53f   : > { %v4449_v30 = vpop.f32.mrb[24].mxu1 }
 0x540   : > { %v1986_v31 = vadd.f32 %v4449_v30, %v5919_v48  ;;  %v1980_v24 = vpop.f32.mrb[25].mxu1 }
 0x541   : > { %v1981_v35 = vadd.f32 %v5919_v48, %v1980_v24 }
 0x542   : > { %v5925_v14 = vadd.f32 %v1986_v31, %v1063_v3 }
 0x543   : > { %v5929_v4 = vadd.f32 %v1981_v35, %v1062_v20  ;;  %v4452_v18 = vpop.f32.mrb[26].mxu1  ;;  %v6489_v35 = vmax.f32 %v5635_v56, 0.0  ;;  %v6490_v56 = vmax.f32 %v5652_v33, 0.0 }
 0x544   : > { %v2076_v21 = vmax.f32 %v5925_v14, 0.0  ;;  %v1996_v16 = vadd.f32 %v4452_v18, %v5919_v48  ;;  %v1990_v8 = vpop.f32.mrb[27].mxu1 }
 0x545   : > { %v2075_v19 = vmax.f32 %v5929_v4, 0.0  ;;  %v1991_v25 = vadd.f32 %v5919_v48, %v1990_v8 }
 0x546   : > { %v5937_v49 = vadd.f32 %v1996_v16, %v1065_v36  ;;  %v6487_v36 = vmax.f32 %v5618_v43, 0.0  ;;  %v6488_v43 = vmax.f32 %v5630_v54, 0.0 }
 0x547   : > { %v5941_v60 = vadd.f32 %v1991_v25, %v1064_v40  ;;  %v4455_v61 = vpop.f32.mrb[28].mxu1  ;;  %v4903_v3 = vpack.c.bf16 %v2076_v21, %v2075_v19 }
 0x548   : > { %v2078_v20 = vmax.f32 %v5937_v49, 0.0  ;;  %v2006_v7 = vadd.f32 %v4455_v61, %v5919_v48  ;;  %v2000_v17 = vpop.f32.mrb[29].mxu1 }
 0x549   : > { %v2077_v26 = vmax.f32 %v5941_v60, 0.0  ;;  %v2001_v28 = vadd.f32 %v5919_v48, %v2000_v17  ;;  %4904 = vmatprep.subr.bf16.mxu0 %v4903_v3 }
 0x54a   : > { %v5953_v29 = vadd.f32 %v2006_v7, %v1067_v47  ;;  %4906 = vmatpush3.bf16.msra.mxu0 %v4903_v3 }
 0x54b   : > { %v5957_v40 = vadd.f32 %v2001_v28, %v6487_v36  ;;  %v4458_v12 = vpop.f32.mrb[30].mxu1  ;;  %v4907_v27 = vpack.c.bf16 %v2078_v20, %v2077_v26  ;;  %v6491_v28 = vmax.f32 %v5656_v34, 0.0 }
 0x54c   : > { %v2080_v5 = vmax.f32 %v5953_v29, 0.0  ;;  %v2016_v30 = vadd.f32 %v4458_v12, %v5919_v48  ;;  %v2010_v31 = vpop.f32.mrb[31].mxu1 }
 0x54d   : > { %v2079_v42 = vmax.f32 %v5957_v40, 0.0  ;;  %v2011_v47 = vadd.f32 %v5919_v48, %v2010_v31  ;;  %4908 = vmatprep.subr.bf16.mxu0 %v4907_v27 }
 0x54e   : > { %v5969_v24 = vadd.f32 %v2016_v30, %v6488_v43  ;;  %4910 = vmatpush3.bf16.msra.mxu0 %v4907_v27  ;;  %v6493_v43 = vmax.f32 %v5673_v57, 0.0  ;;  %v6494_v57 = vmax.f32 %v5690_v45, 0.0 }
 0x54f   : > { %v5973_v18 = vadd.f32 %v2011_v47, %v6489_v35  ;;  %v4461_v16 = vpop.f32.mrb[32].mxu1  ;;  %v4911_v8 = vpack.c.bf16 %v2080_v5, %v2079_v42 }
 0x550   : > { %v2082_v25 = vmax.f32 %v5969_v24, 0.0  ;;  %v2026_v61 = vadd.f32 %v4461_v16, %v5919_v48  ;;  %v2020_v3 = vpop.f32.mrb[33].mxu1 }
 0x551   : > { %v2081_v54 = vmax.f32 %v5973_v18, 0.0  ;;  %v2021_v7 = vadd.f32 %v5919_v48, %v2020_v3  ;;  %4480 = vmatmul.mubr.msk.f32.vlgmr.msra.gmra.mrb[40].mxu0 %vm1078_vm1, %v5633_v55  ;;  %4912 = vmatprep.subr.bf16.mxu0 %v4911_v8  ;;  %v5143_v18 = vld [vmem:[%s5521_s17 + $0x10] sm:$0xff] }
 0x552   : > { %v5987_v17 = vadd.f32 %v2026_v61, %v6490_v56  ;;  %4914 = vmatpush3.bf16.msra.mxu0 %v4911_v8  ;;  %4490 = vmatprep.mubr.msk.f32.mxu0 %vm1078_vm1, %v5643_v62  ;;  %v6492_v62 = vmax.f32 %v5668_v50, 0.0 }
 0x553   : > { %v5993_v36 = vadd.f32 %v2021_v7, %v6491_v28  ;;  %v4464_v12 = vpop.f32.mrb[34].mxu1  ;;  %v4915_v27 = vpack.c.bf16 %v2082_v25, %v2081_v54 }
 0x554   : > { %v2084_v55 = vmax.f32 %v5987_v17, 0.0  ;;  %v2036_v33 = vadd.f32 %v4464_v12, %v5919_v48  ;;  %v2030_v30 = vpop.f32.mrb[35].mxu1  ;;  %v6495_v12 = vmax.f32 %v5694_v46, 0.0 }
 0x555   : > { %v2083_v31 = vmax.f32 %v5993_v36, 0.0  ;;  %v2031_v47 = vadd.f32 %v5919_v48, %v2030_v30  ;;  %4916 = vmatprep.subr.bf16.mxu0 %v4915_v27 }
 0x556   : > { %v6005_v34 = vadd.f32 %v2036_v33, %v6492_v62  ;;  %4918 = vmatpush3.bf16.msra.mxu0 %v4915_v27 }
 0x557   : > { %v6009_v35 = vadd.f32 %v2031_v47, %v6493_v43  ;;  %v4467_v16 = vpop.f32.mrb[36].mxu1  ;;  %v4919_v8 = vpack.c.bf16 %v2084_v55, %v2083_v31 }
 0x558   : > { %v2086_v61 = vmax.f32 %v6005_v34, 0.0  ;;  %v2046_v3 = vadd.f32 %v4467_v16, %v5919_v48  ;;  %v2040_v7 = vpop.f32.mrb[37].mxu1  ;;  %v6497_v16 = vmax.f32 %v5711_v63, 0.0 }
 0x559   : > { %v2085_v50 = vmax.f32 %v6009_v35, 0.0  ;;  %v2041_v56 = vadd.f32 %v5919_v48, %v2040_v7  ;;  %4491 = vmatmul.mubr.msk.f32.vlgmr.msra.gmra.mrb[42].mxu0 %vm1078_vm1, %v5671_v52  ;;  %4920 = vmatprep.subr.bf16.mxu0 %v4919_v8  ;;  %v5145_v35 = vld [vmem:[%s5521_s17 + $0x20] sm:$0xff] }
 0x55a   : > { %v6023_v28 = vadd.f32 %v2046_v3, %v6494_v57  ;;  %4922 = vmatpush3.bf16.msra.mxu0 %v4919_v8  ;;  %4501 = vmatprep.mubr.msk.f32.mxu0 %vm1078_vm1, %v5681_v11  ;;  %v6496_v11 = vmax.f32 %v5706_v37, 0.0  ;;  %v5125_v37 = vld [vmem:[%s5357_s26] sm:$0xff] }
 0x55b   : > { %v6029_v27 = vadd.f32 %v2041_v56, %v6495_v12  ;;  %v4470_v33 = vpop.f32.mrb[38].mxu1  ;;  %v4923_v30 = vpack.c.bf16 %v2086_v61, %v2085_v50 }
 0x55c   : > { %v2088_v52 = vmax.f32 %v6023_v28, 0.0  ;;  %v2056_v45 = vadd.f32 %v4470_v33, %v5919_v48  ;;  %v2050_v47 = vpop.f32.mrb[39].mxu1 }
 0x55d   : > { %v2087_v62 = vmax.f32 %v6029_v27, 0.0  ;;  %v2051_v43 = vadd.f32 %v5919_v48, %v2050_v47  ;;  %4924 = vmatprep.subr.bf16.mxu0 %v4923_v30  ;;  %v3802_v47 = vld [vmem:[%s6464_s4 + $0x108] sm:$0xff] }
 0x55e   : > { %v6041_v46 = vadd.f32 %v2056_v45, %v6496_v11  ;;  %4926 = vmatpush3.bf16.msra.mxu0 %v4923_v30 }
 0x55f   : > { %v6045_v8 = vadd.f32 %v2051_v43, %v6497_v16  ;;  %v4927_v3 = vpack.c.bf16 %v2088_v52, %v2087_v62  ;;  %v3803_v43 = vld [vmem:[%s6464_s4 + $0x110] sm:$0xff]  ;;  %v3804_v16 = vld [vmem:[%s6464_s4 + $0x118] sm:$0xff] }
 0x560   : > { %v2090_v7 = vmax.f32 %v6041_v46, 0.0 }
 0x561   : > { %v2089_v48 = vmax.f32 %v6045_v8, 0.0  ;;  %4502 = vmatmul.mubr.msk.f32.vlgmr.msra.gmra.mrb[44].mxu0 %vm1078_vm1, %v5709_v44  ;;  %4928 = vmatprep.subr.bf16.mxu0 %v4927_v3 }
 0x562   : > { %4930 = vmatpush3.bf16.msra.mxu0 %v4927_v3  ;;  %4512 = vmatprep.mubr.msk.f32.mxu0 %vm1078_vm1, %v5718_v39  ;;  %v4987_v3 = vpack.c.bf16 %v3804_v16, %v3803_v43  ;;  %v3813_v43 = vld [vmem:[%s6464_s4 + $0x160] sm:$0xff] }
 0x563   : > { %v4931_v63 = vpack.c.bf16 %v2090_v7, %v2089_v48 }
 0x565   : > { %4932 = vmatprep.subr.bf16.mxu0 %v4931_v63 }
 0x566   : > { %4934 = vmatpush3.bf16.msra.mxu0 %v4931_v63  ;;  %v3805_v63 = vld [vmem:[%s6464_s4 + $0x120] sm:$0xff] }
 0x569   : > { %4513 = vmatmul.mubr.msk.f32.vlgmr.msra.gmra.mrb[46].mxu0 %vm1078_vm1, %v5731_v41  ;;  %v3801_v41 = vld [vmem:[%s6464_s4 + $0x100] sm:$0xff] }
 0x56a   : > { %4563 = vmatprep.mubr.msk.f32.mxu0 %vm506_vm0, %v5125_v37  ;;  %v4983_v11 = vpack.c.bf16 %v3802_v47, %v3801_v41  ;;  %v3806_v37 = vld [vmem:[%s6464_s4 + $0x128] sm:$0xff]  ;;  %v3812_v41 = vld [vmem:[%s6464_s4 + $0x158] sm:$0xff] }
 0x56c   : > { %4984 = vmatprep.subr.bf16.mxu1 %v4983_v11 }
 0x624   : > { %v4481_v56 = vpop.f32.mrb[40].mxu0 }
 0x625   : > { %v2157_v44 = vpop.f32.mrb[41].mxu0 }
 0x626   : > { %4547 = vmatprep.mubr.f32.mxu1 %v2157_v44  ;;  %v3807_v44 = vld [vmem:[%s6464_s4 + $0x130] sm:$0xff] }
 0x627   : > { %4548 = vmatmul.mubr.f32.vlgmr.msra.gmra.mrb[40].mxu1 %v4481_v56  ;;  %v4991_v56 = vpack.c.bf16 %v3806_v37, %v3805_v63  ;;  %v3816_v63 = vld [vmem:[%s6464_s4 + $0x178] sm:$0xff] }
 0x628   : > { %4986 = vmatpush3.bf16.msra.mxu1 %v4983_v11  ;;  %v3814_v11 = vld [vmem:[%s6464_s4 + $0x168] sm:$0xff] }
 0x629   : > { %4988 = vmatprep.subr.bf16.mxu1 %v4987_v3  ;;  %v5007_v16 = vpack.c.bf16 %v3814_v11, %v3813_v43 }
 0x62c   : > { %v4492_v57 = vpop.f32.mrb[42].mxu0  ;;  %4990 = vmatpush3.bf16.msra.mxu1 %v4987_v3  ;;  %v3815_v3 = vld [vmem:[%s6464_s4 + $0x170] sm:$0xff] }
 0x62d   : > { %v2232_v12 = vpop.f32.mrb[43].mxu0  ;;  %4992 = vmatprep.subr.bf16.mxu1 %v4991_v56  ;;  %v5011_v37 = vpack.c.bf16 %v3816_v63, %v3815_v3  ;;  %v5126_v63 = vld [vmem:[%s5357_s26 + $0x8] sm:$0xff] }
 0x62e   : > { %4550 = vmatprep.mubr.f32.mxu1 %v2232_v12 }
 0x62f   : > { %4551 = vmatmul.mubr.f32.gmra.mrb[42].mxu1 %v4492_v57  ;;  %v3808_v57 = vld [vmem:[%s6464_s4 + $0x138] sm:$0xff] }
 0x630   : > { %v4995_v12 = vpack.c.bf16 %v3808_v57, %v3807_v44  ;;  %4994 = vmatpush3.bf16.msra.mxu1 %v4991_v56  ;;  %v3800_v56 = vld [vmem:[%s6467_s7 + $0x1] ss:$0 sm:$0xff] }
 0x632   : > { %4996 = vmatprep.subr.bf16.mxu1 %v4995_v12 }
 0x634   : > { %v4503_v39 = vpop.f32.mrb[44].mxu0  ;;  %4998 = vmatpush3.bf16.msra.mxu1 %v4995_v12 }
 0x635   : > { %v2307_v33 = vpop.f32.mrb[45].mxu0 }
 0x636   : > { %4553 = vmatprep.mubr.f32.mxu1 %v2307_v33  ;;  %v3810_v33 = vld [vmem:[%s6464_s4 + $0x148] sm:$0xff] }
 0x637   : > { %4554 = vmatmul.mubr.f32.gmra.mrb[44].mxu1 %v4503_v39  ;;  %v3809_v39 = vld [vmem:[%s6464_s4 + $0x140] sm:$0xff] }
 0x63c   : > { %v4514_v30 = vpop.f32.mrb[46].mxu0 }
 0x63d   : > { %v2382_v45 = vpop.f32.mrb[47].mxu0 }
 0x63e   : > { %4556 = vmatprep.mubr.f32.mxu1 %v2382_v45  ;;  %v3811_v45 = vld [vmem:[%s6464_s4 + $0x150] sm:$0xff] }
 0x63f   : > { %4557 = vmatmul.mubr.f32.gmra.mrb[46].mxu1 %v4514_v30  ;;  %v4999_v30 = vpack.c.bf16 %v3810_v33, %v3809_v39  ;;  %v5003_v47 = vpack.c.bf16 %v3812_v41, %v3811_v45 }
 0x641   : > { %5000 = vmatprep.subr.bf16.mxu1 %v4999_v30 }
 0x642   : > { %5002 = vmatpush3.bf16.msra.mxu1 %v4999_v30 }
 0x643   : > { %5004 = vmatprep.subr.bf16.mxu1 %v5003_v47 }
 0x646   : > { %5006 = vmatpush3.bf16.msra.mxu1 %v5003_v47 }
 0x647   : > { %5008 = vmatprep.subr.bf16.mxu1 %v5007_v16 }
 0x64a   : > { %5010 = vmatpush3.bf16.msra.mxu1 %v5007_v16 }
 0x64b   : > { %5012 = vmatprep.subr.bf16.mxu1 %v5011_v37 }
 0x64e   : > { %5014 = vmatpush3.bf16.msra.mxu1 %v5011_v37  ;;  %v5127_v37 = vld [vmem:[%s5357_s26 + $0x10] sm:$0xff] }
 0x6fa   : > { %v4549_v44 = vpop.f32.mrb[40].mxu1 }
 0x6fb   : > { %v2469_v57 = vadd.f32 %v4549_v44, %v3800_v56  ;;  %v2463_v12 = vpop.f32.mrb[41].mxu1 }
 0x6fc   : > { %v2464_v39 = vadd.f32 %v3800_v56, %v2463_v12 }
 0x6fd   : > { %v6118_v33 = vadd.f32 %v2469_v57, %v1523_v15  ;;  %v5128_v57 = vld [vmem:[%s5357_s26 + $0x18] sm:$0xff] }
 0x6fe   : > { %v6122_v30 = vadd.f32 %v2464_v39, %v1522_v59  ;;  %v5129_v39 = vld [vmem:[%s5357_s26 + $0x20] sm:$0xff] }
 0x6ff   : > { %v2511_v45 = vmax.f32 %v6118_v33, 0.0 }
 0x700   : > { %v2510_v41 = vmax.f32 %v6122_v30, 0.0 }
 0x702   : > { %v4552_v47 = vpop.f32.mrb[42].mxu1  ;;  %v4967_v43 = vpack.c.bf16 %v2511_v45, %v2510_v41 }
 0x703   : > { %v2479_v11 = vadd.f32 %v4552_v47, %v3800_v56  ;;  %v2473_v58 = vpop.f32.mrb[43].mxu1 }
 0x704   : > { %v2474_v16 = vadd.f32 %v3800_v56, %v2473_v58  ;;  %4968 = vmatprep.subr.bf16.mxu0 %v4967_v43  ;;  %v5130_v58 = vld [vmem:[%s5357_s26 + $0x28] sm:$0xff] }
 0x705   : > { %v6132_v53 = vadd.f32 %v2479_v11, %v1525_v6  ;;  %4970 = vmatpush3.bf16.msra.mxu0 %v4967_v43 }
 0x706   : > { %v6136_v15 = vadd.f32 %v2474_v16, %v1524_v38 }
 0x707   : > { %v2513_v59 = vmax.f32 %v6132_v53, 0.0 }
 0x708   : > { %v2512_v3 = vmax.f32 %v6136_v15, 0.0  ;;  %4564 = vmatmul.mubr.msk.f32.vlgmr.msra.gmra.mrb[48].mxu0 %vm506_vm0, %v5126_v63 }
 0x709   : > { %4566 = vmatprep.mubr.msk.f32.mxu0 %vm506_vm0, %v5127_v37  ;;  %v5132_v37 = vld [vmem:[%s5357_s26 + $0x38] sm:$0xff] }
 0x70a   : > { %v4555_v2 = vpop.f32.mrb[44].mxu1  ;;  %v4971_v1 = vpack.c.bf16 %v2513_v59, %v2512_v3 }
 0x70b   : > { %v2489_v6 = vadd.f32 %v4555_v2, %v3800_v56  ;;  %v2483_v38 = vpop.f32.mrb[45].mxu1 }
 0x70c   : > { %v2484_v44 = vadd.f32 %v3800_v56, %v2483_v38  ;;  %4567 = vmatmul.mubr.msk.f32.gmra.mrb[50].mxu0 %vm506_vm0, %v5128_v57  ;;  %4972 = vmatprep.subr.bf16.mxu0 %v4971_v1  ;;  %v5138_v57 = vld [vmem:[%s5357_s26 + $0x68] sm:$0xff] }
 0x70d   : > { %v6152_v12 = vadd.f32 %v2489_v6, %v1527_v10  ;;  %4974 = vmatpush3.bf16.msra.mxu0 %v4971_v1  ;;  %4573 = vmatprep.mubr.msk.f32.mxu0 %vm506_vm0, %v5129_v39  ;;  %v5133_v1 = vld [vmem:[%s5357_s26 + $0x40] sm:$0xff]  ;;  %v5139_v39 = vld [vmem:[%s5357_s26 + $0x70] sm:$0xff] }
 0x70e   : > { %v6158_v47 = vadd.f32 %v2484_v44, %v1526_v0  ;;  %v5134_v44 = vld [vmem:[%s5357_s26 + $0x48] sm:$0xff] }
 0x70f   : > { %v2515_v43 = vmax.f32 %v6152_v12, 0.0 }
 0x710   : > { %v2514_v11 = vmax.f32 %v6158_v47, 0.0  ;;  %4574 = vmatmul.mubr.msk.f32.vlgmr.msra.gmra.mrb[52].mxu0 %vm506_vm0, %v5130_v58  ;;  %v5140_v58 = vld [vmem:[%s5357_s26 + $0x78] sm:$0xff] }
 0x711   : > { %4576 = vmatprep.mubr.msk.f32.mxu0 %vm506_vm0, %v5131_v51  ;;  %v5141_v51 = vld [vmem:[%s5521_s17] sm:$0xff] }
 0x712   : > { %v4558_v10 = vpop.f32.mrb[46].mxu1  ;;  %v4975_v9 = vpack.c.bf16 %v2515_v43, %v2514_v11 }
 0x713   : > { %v2499_v0 = vadd.f32 %v4558_v10, %v3800_v56  ;;  %v2493_v16 = vpop.f32.mrb[47].mxu1 }
 0x714   : > { %v2494_v63 = vadd.f32 %v3800_v56, %v2493_v16  ;;  %4577 = vmatmul.mubr.msk.f32.gmra.mrb[54].mxu0 %vm506_vm0, %v5132_v37  ;;  %4976 = vmatprep.subr.bf16.mxu0 %v4975_v9 }
 0x715   : > { %v6174_v2 = vadd.f32 %v2499_v0, %v1529_v23  ;;  %4978 = vmatpush3.bf16.msra.mxu0 %v4975_v9  ;;  %4583 = vmatprep.mubr.msk.f32.mxu0 %vm506_vm0, %v5133_v1  ;;  %v5136_v23 = vld [vmem:[%s5357_s26 + $0x58] sm:$0xff] }
 0x716   : > { %v6180_v6 = vadd.f32 %v2494_v63, %v1528_v13  ;;  %v5137_v13 = vld [vmem:[%s5357_s26 + $0x60] sm:$0xff]  ;;  %s6269_s26 = scalar_lea.vmem [#allocation2], %s3701_s16 }
 0x717   : > { %v2517_v56 = vmax.f32 %v6174_v2, 0.0  ;;  %s3550_s24 = sshll.u32 %s6269_s26, 4  ;;  %s6348_s24 = int_to_ptr.vmem [resolvable:$true] %s3550_s24 }
 0x718   : > { %v2516_v38 = vmax.f32 %v6180_v6, 0.0  ;;  %4584 = vmatmul.mubr.msk.f32.vlgmr.msra.gmra.mrb[56].mxu0 %vm506_vm0, %v5134_v44  ;;  %s5149_s29 = scalar_lea.vmem %s6348_s24, 2048  ;;  %p5156_p0 = scmp.lt.s32.totalorder %s6348_s24, %s5154_s21 }
 0x719   : > { %4586 = vmatprep.mubr.msk.f32.mxu0 %vm506_vm0, %v5135_v32  ;;  %p5150_p11 = scmp.ne.s32.totalorder %s6348_s24, %s5149_s29  ;;  %p5157_p1 = scmp.lt.s32.totalorder %s5155_s14, %s5149_s29 }
 0x71a   : > { %v4979_v22 = vpack.c.bf16 %v2517_v56, %v2516_v38 }
 0x71b   : > { %p5151_p12 = pnand %p5150_p11, %p5337_p5  ;;  %p5158_p2 = por %p5157_p1, %p5156_p0 }
 0x71c   : > { %4587 = vmatmul.mubr.msk.f32.gmra.mrb[58].mxu0 %vm506_vm0, %v5136_v23  ;;  %4980 = vmatprep.subr.bf16.mxu0 %v4979_v22 }
 0x71d   : > { %4982 = vmatpush3.bf16.msra.mxu0 %v4979_v22  ;;  %4593 = vmatprep.mubr.msk.f32.mxu0 %vm506_vm0, %v5137_v13  ;;  %p5152_p13 = pneg %p5151_p12 }
 0x71f   : > { %p5159_p3 = pnand %p5158_p2, %p5152_p13 }
 0x720   : > { %4594 = vmatmul.mubr.msk.f32.vlgmr.msra.gmra.mrb[60].mxu0 %vm506_vm0, %v5138_v57 }
 0x721   : > { %4596 = vmatprep.mubr.msk.f32.mxu0 %vm506_vm0, %v5139_v39 }
 0x724   : > { %4597 = vmatmul.mubr.msk.f32.gmra.mrb[62].mxu0 %vm506_vm0, %v5140_v58 }
 0x725   : > { %4663 = vmatprep.mubr.msk.f32.mxu0 %vm1078_vm1, %v5141_v51 }
 0x7db   : > { %v4565_v10 = vpop.f32.mrb[48].mxu0 }
 0x7dc   : > { %v2622_v9 = vpop.f32.mrb[49].mxu0 }
 0x7dd   : > { %4631 = vmatprep.mubr.f32.mxu1 %v2622_v9  ;;  %v3819_v9 = vld [vmem:[%s6466_s6 + $0x108] sm:$0xff] }
 0x7de   : > { %4632 = vmatmul.mubr.f32.vlgmr.msra.gmra.mrb[48].mxu1 %v4565_v10  ;;  %v3818_v10 = vld [vmem:[%s6466_s6 + $0x100] sm:$0xff] }
 0x7df   : > { %v4568_v0 = vpop.f32.mrb[50].mxu0 }
 0x7e0   : > { %v2632_v16 = vpop.f32.mrb[51].mxu0 }
 0x7e1   : > { %4634 = vmatprep.mubr.f32.mxu1 %v2632_v16  ;;  %v5047_v16 = vpack.c.bf16 %v3819_v9, %v3818_v10  ;;  %v3829_v10 = vld [vmem:[%s6466_s6 + $0x158] sm:$0xff] }
 0x7e2   : > { %4635 = vmatmul.mubr.f32.gmra.mrb[50].mxu1 %v4568_v0  ;;  %v3820_v0 = vld [vmem:[%s6466_s6 + $0x110] sm:$0xff] }
 0x7e3   : > { %v4575_v63 = vpop.f32.mrb[52].mxu0  ;;  %5048 = vmatprep.subr.bf16.mxu1 %v5047_v16 }
 0x7e4   : > { %v2707_v37 = vpop.f32.mrb[53].mxu0  ;;  %5050 = vmatpush3.bf16.msra.mxu1 %v5047_v16  ;;  %v3831_v16 = vld [vmem:[%s6466_s6 + $0x168] sm:$0xff] }
 0x7e5   : > { %4637 = vmatprep.mubr.f32.mxu1 %v2707_v37 }
 0x7e6   : > { %4638 = vmatmul.mubr.f32.gmra.mrb[52].mxu1 %v4575_v63  ;;  %v3821_v63 = vld [vmem:[%s6466_s6 + $0x118] sm:$0xff] }
 0x7e7   : > { %v4578_v1 = vpop.f32.mrb[54].mxu0  ;;  %v5051_v37 = vpack.c.bf16 %v3821_v63, %v3820_v0  ;;  %v3830_v0 = vld [vmem:[%s6466_s6 + $0x160] sm:$0xff] }
 0x7e8   : > { %v2717_v44 = vpop.f32.mrb[55].mxu0  ;;  %v5071_v63 = vpack.c.bf16 %v3831_v16, %v3830_v0 }
 0x7e9   : > { %4640 = vmatprep.mubr.f32.mxu1 %v2717_v44  ;;  %v3823_v44 = vld [vmem:[%s6466_s6 + $0x128] sm:$0xff]  ;;  %5052 = vmatprep.subr.bf16.mxu1 %v5051_v37 }
 0x7ea   : > { %4641 = vmatmul.mubr.f32.gmra.mrb[54].mxu1 %v4578_v1  ;;  %v3822_v1 = vld [vmem:[%s6466_s6 + $0x120] sm:$0xff] }
 0x7eb   : > { %v4585_v32 = vpop.f32.mrb[56].mxu0  ;;  %5054 = vmatpush3.bf16.msra.mxu1 %v5051_v37  ;;  %v3832_v37 = vld [vmem:[%s6466_s6 + $0x170] sm:$0xff] }
 0x7ec   : > { %v2792_v22 = vpop.f32.mrb[57].mxu0 }
 0x7ed   : > { %4643 = vmatprep.mubr.f32.mxu1 %v2792_v22  ;;  %v3824_v22 = vld [vmem:[%s6466_s6 + $0x130] sm:$0xff] }
 0x7ee   : > { %4644 = vmatmul.mubr.f32.gmra.mrb[56].mxu1 %v4585_v32  ;;  %v5055_v32 = vpack.c.bf16 %v3823_v44, %v3822_v1  ;;  %v3833_v1 = vld [vmem:[%s6466_s6 + $0x178] sm:$0xff] }
 0x7ef   : > { %v4588_v23 = vpop.f32.mrb[58].mxu0  ;;  %v5075_v44 = vpack.c.bf16 %v3833_v1, %v3832_v37 }
 0x7f0   : > { %v2802_v13 = vpop.f32.mrb[59].mxu0  ;;  %5056 = vmatprep.subr.bf16.mxu1 %v5055_v32 }
 0x7f1   : > { %4646 = vmatprep.mubr.f32.mxu1 %v2802_v13  ;;  %5058 = vmatpush3.bf16.msra.mxu1 %v5055_v32  ;;  %v6258_v32 = vld [vmem:[%s6465_s5 + $0x2] ss:$0 sm:$0xff] }
 0x7f2   : > { %4647 = vmatmul.mubr.f32.gmra.mrb[58].mxu1 %v4588_v23  ;;  %v3825_v23 = vld [vmem:[%s6466_s6 + $0x138] sm:$0xff] }
 0x7f3   : > { %v4595_v57 = vpop.f32.mrb[60].mxu0  ;;  %v5059_v13 = vpack.c.bf16 %v3825_v23, %v3824_v22 }
 0x7f4   : > { %v2877_v39 = vpop.f32.mrb[61].mxu0 }
 0x7f5   : > { %4649 = vmatprep.mubr.f32.mxu1 %v2877_v39  ;;  %v3827_v39 = vld [vmem:[%s6466_s6 + $0x148] sm:$0xff]  ;;  %5060 = vmatprep.subr.bf16.mxu1 %v5059_v13 }
 0x7f6   : > { %4650 = vmatmul.mubr.f32.gmra.mrb[60].mxu1 %v4595_v57  ;;  %v3826_v57 = vld [vmem:[%s6466_s6 + $0x140] sm:$0xff] }
 0x7f7   : > { %v4598_v58 = vpop.f32.mrb[62].mxu0  ;;  %5062 = vmatpush3.bf16.msra.mxu1 %v5059_v13 }
 0x7f8   : > { %v2887_v51 = vpop.f32.mrb[63].mxu0 }
 0x7f9   : > { %4652 = vmatprep.mubr.f32.mxu1 %v2887_v51  ;;  %v3828_v51 = vld [vmem:[%s6466_s6 + $0x150] sm:$0xff] }
 0x7fa   : > { %4653 = vmatmul.mubr.f32.gmra.mrb[62].mxu1 %v4598_v58  ;;  %v5063_v58 = vpack.c.bf16 %v3827_v39, %v3826_v57  ;;  %v5067_v9 = vpack.c.bf16 %v3829_v10, %v3828_v51 }
 0x7fc   : > { %5064 = vmatprep.subr.bf16.mxu1 %v5063_v58 }
 0x7fd   : > { %5066 = vmatpush3.bf16.msra.mxu1 %v5063_v58 }
 0x7fe   : > { %5068 = vmatprep.subr.bf16.mxu1 %v5067_v9 }
 0x801   : > { %5070 = vmatpush3.bf16.msra.mxu1 %v5067_v9 }
 0x802   : > { %5072 = vmatprep.subr.bf16.mxu1 %v5071_v63 }
 0x805   : > { %5074 = vmatpush3.bf16.msra.mxu1 %v5071_v63 }
 0x806   : > { %5076 = vmatprep.subr.bf16.mxu1 %v5075_v44 }
 0x809   : > { %5078 = vmatpush3.bf16.msra.mxu1 %v5075_v44 }
 0x8b1   : > { %v4633_v22 = vpop.f32.mrb[48].mxu1 }
 0x8b2   : > { %v2974_v23 = vadd.f32 %v4633_v22, %v6258_v32  ;;  %v2968_v13 = vpop.f32.mrb[49].mxu1 }
 0x8b3   : > { %v2969_v57 = vadd.f32 %v6258_v32, %v2968_v13 }
 0x8b4   : > { %v3048_v39 = vadd.f32 %v2974_v23, %v2076_v21 }
 0x8b5   : > { %v3047_v58 = vadd.f32 %v2969_v57, %v2075_v19  ;;  %v4636_v51 = vpop.f32.mrb[50].mxu1 }
 0x8b6   : > { %v3064_v10 = vmax.f32 %v3048_v39, 0.0  ;;  %v2984_v9 = vadd.f32 %v4636_v51, %v6258_v32  ;;  %v2978_v0 = vpop.f32.mrb[51].mxu1 }
 0x8b7   : > { %v3063_v16 = vmax.f32 %v3047_v58, 0.0  ;;  %v2979_v63 = vadd.f32 %v6258_v32, %v2978_v0 }
 0x8b8   : > { %3507 = vst [vmem:[%s6269_s26 + $0x8] sm:$0xff] %v3064_v10  ;;  %v3050_v14 = vadd.f32 %v2984_v9, %v2078_v20 }
 0x8b9   : > { %3506 = vst [vmem:[%s6269_s26] sm:$0xff] %v3063_v16  ;;  %v3049_v4 = vadd.f32 %v2979_v63, %v2077_v26  ;;  %v4639_v21 = vpop.f32.mrb[52].mxu1  ;;  %v5015_v19 = vpack.c.bf16 %v3064_v10, %v3063_v16 }
 0x8ba   : > { %v3066_v37 = vmax.f32 %v3050_v14, 0.0  ;;  %v2994_v1 = vadd.f32 %v4639_v21, %v6258_v32  ;;  %v2988_v44 = vpop.f32.mrb[53].mxu1  ;;  %v5142_v14 = vld [vmem:[%s5521_s17 + $0x8] sm:$0xff] }
 0x8bb   : > { %v3065_v22 = vmax.f32 %v3049_v4, 0.0  ;;  %v2989_v23 = vadd.f32 %v6258_v32, %v2988_v44  ;;  %5016 = vmatprep.subr.bf16.mxu0 %v5015_v19 }
 0x8bc   : > { %3509 = vst [vmem:[%s6269_s26 + $0x18] sm:$0xff] %v3066_v37  ;;  %v3052_v49 = vadd.f32 %v2994_v1, %v2080_v5  ;;  %5018 = vmatpush3.bf16.msra.mxu0 %v5015_v19 }
 0x8bd   : > { %3508 = vst [vmem:[%s6269_s26 + $0x10] sm:$0xff] %v3065_v22  ;;  %v3051_v60 = vadd.f32 %v2989_v23, %v2079_v42  ;;  %v4642_v20 = vpop.f32.mrb[54].mxu1  ;;  %v5019_v26 = vpack.c.bf16 %v3066_v37, %v3065_v22 }
 0x8be   : > { %v3068_v13 = vmax.f32 %v3052_v49, 0.0  ;;  %v3004_v57 = vadd.f32 %v4642_v20, %v6258_v32  ;;  %v2998_v39 = vpop.f32.mrb[55].mxu1 }
 0x8bf   : > { %v3067_v58 = vmax.f32 %v3051_v60, 0.0  ;;  %v2999_v51 = vadd.f32 %v6258_v32, %v2998_v39  ;;  %5020 = vmatprep.subr.bf16.mxu0 %v5019_v26 }
 0x8c0   : > { %3511 = vst [vmem:[%s6269_s26 + $0x28] sm:$0xff] %v3068_v13  ;;  %v3054_v29 = vadd.f32 %v3004_v57, %v2082_v25  ;;  %5022 = vmatpush3.bf16.msra.mxu0 %v5019_v26  ;;  %v5144_v26 = vld [vmem:[%s5521_s17 + $0x18] sm:$0xff] }
 0x8c1   : > { %3510 = vst [vmem:[%s6269_s26 + $0x20] sm:$0xff] %v3067_v58  ;;  %v3053_v40 = vadd.f32 %v2999_v51, %v2081_v54  ;;  %v4645_v5 = vpop.f32.mrb[56].mxu1  ;;  %v5023_v42 = vpack.c.bf16 %v3068_v13, %v3067_v58 }
 0x8c2   : > { %v3070_v10 = vmax.f32 %v3054_v29, 0.0  ;;  %v3014_v9 = vadd.f32 %v4645_v5, %v6258_v32  ;;  %v3008_v0 = vpop.f32.mrb[57].mxu1  ;;  %v5146_v5 = vld [vmem:[%s5521_s17 + $0x28] sm:$0xff] }
 0x8c3   : > { %v3069_v16 = vmax.f32 %v3053_v40, 0.0  ;;  %v3009_v63 = vadd.f32 %v6258_v32, %v3008_v0  ;;  %4664 = vmatmul.mubr.msk.f32.vlgmr.msra.gmra.mrb[64].mxu0 %vm1078_vm1, %v5142_v14  ;;  %5024 = vmatprep.subr.bf16.mxu0 %v5023_v42 }
 0x8c4   : > { %3513 = vst [vmem:[%s6269_s26 + $0x38] sm:$0xff] %v3070_v10  ;;  %v3056_v24 = vadd.f32 %v3014_v9, %v2084_v55  ;;  %5026 = vmatpush3.bf16.msra.mxu0 %v5023_v42  ;;  %4674 = vmatprep.mubr.msk.f32.mxu0 %vm1078_vm1, %v5143_v18 }
 0x8c5   : > { %3512 = vst [vmem:[%s6269_s26 + $0x30] sm:$0xff] %v3069_v16  ;;  %v3055_v25 = vadd.f32 %v3009_v63, %v2083_v31  ;;  %v4648_v54 = vpop.f32.mrb[58].mxu1  ;;  %v5027_v4 = vpack.c.bf16 %v3070_v10, %v3069_v16 }
 0x8c6   : > { %v3072_v21 = vmax.f32 %v3056_v24, 0.0  ;;  %v3024_v19 = vadd.f32 %v4648_v54, %v6258_v32  ;;  %v3018_v37 = vpop.f32.mrb[59].mxu1 }
 0x8c7   : > { %v3071_v1 = vmax.f32 %v3055_v25, 0.0  ;;  %v3019_v17 = vadd.f32 %v6258_v32, %v3018_v37  ;;  %5028 = vmatprep.subr.bf16.mxu0 %v5027_v4 }
 0x8c8   : > { %3515 = vst [vmem:[%s6269_s26 + $0x48] sm:$0xff] %v3072_v21  ;;  %v3058_v55 = vadd.f32 %v3024_v19, %v2086_v61  ;;  %5030 = vmatpush3.bf16.msra.mxu0 %v5027_v4 }
 0x8c9   : > { %3514 = vst [vmem:[%s6269_s26 + $0x40] sm:$0xff] %v3071_v1  ;;  %v3057_v36 = vadd.f32 %v3019_v17, %v2085_v50  ;;  %v4651_v31 = vpop.f32.mrb[60].mxu1  ;;  %v5031_v44 = vpack.c.bf16 %v3072_v21, %v3071_v1 }
 0x8ca   : > { %v3074_v22 = vmax.f32 %v3058_v55, 0.0  ;;  %v3034_v23 = vadd.f32 %v4651_v31, %v6258_v32  ;;  %v3028_v49 = vpop.f32.mrb[61].mxu1 }
 0x8cb   : > { %v3073_v60 = vmax.f32 %v3057_v36, 0.0  ;;  %v3029_v20 = vadd.f32 %v6258_v32, %v3028_v49  ;;  %4675 = vmatmul.mubr.msk.f32.vlgmr.msra.gmra.mrb[66].mxu0 %vm1078_vm1, %v5144_v26  ;;  %5032 = vmatprep.subr.bf16.mxu0 %v5031_v44 }
 0x8cc   : > { %3517 = vst [vmem:[%s6269_s26 + $0x58] sm:$0xff] %v3074_v22  ;;  %v3060_v34 = vadd.f32 %v3034_v23, %v2088_v52  ;;  %5034 = vmatpush3.bf16.msra.mxu0 %v5031_v44  ;;  %4685 = vmatprep.mubr.msk.f32.mxu0 %vm1078_vm1, %v5145_v35 }
 0x8cd   : > { %3516 = vst [vmem:[%s6269_s26 + $0x50] sm:$0xff] %v3073_v60  ;;  %v3059_v61 = vadd.f32 %v3029_v20, %v2087_v62  ;;  %v4654_v50 = vpop.f32.mrb[62].mxu1  ;;  %v5035_v13 = vpack.c.bf16 %v3074_v22, %v3073_v60 }
 0x8ce   : > { %v3076_v57 = vmax.f32 %v3060_v34, 0.0  ;;  %v3044_v39 = vadd.f32 %v4654_v50, %v6258_v32  ;;  %v3038_v58 = vpop.f32.mrb[63].mxu1 }
 0x8cf   : > { %v3075_v51 = vmax.f32 %v3059_v61, 0.0  ;;  %v3039_v28 = vadd.f32 %v6258_v32, %v3038_v58  ;;  %5036 = vmatprep.subr.bf16.mxu0 %v5035_v13  ;;  %v5147_v32 = vld [vmem:[%s5521_s17 + $0x30] sm:$0xff] }
 0x8d0   : > { %3519 = vst [vmem:[%s6269_s26 + $0x68] sm:$0xff] %v3076_v57  ;;  %v3062_v52 = vadd.f32 %v3044_v39, %v2090_v7  ;;  %5038 = vmatpush3.bf16.msra.mxu0 %v5035_v13  ;;  %v5148_v7 = vld [vmem:[%s5521_s17 + $0x38] sm:$0xff]  ;;  %s3876_s17 = sshll.u32 %s5320_s13, 11 }
 0x8d1   : > { %3518 = vst [vmem:[%s6269_s26 + $0x60] sm:$0xff] %v3075_v51  ;;  %v3061_v27 = vadd.f32 %v3039_v28, %v2089_v48  ;;  %v5039_v62 = vpack.c.bf16 %v3076_v57, %v3075_v51  ;;  %s6346_s27 = scalar_lea.hbm %s6468_s8, %s3876_s17 }
 0x8d2   : > { %v3078_v29 = vmax.f32 %v3062_v52, 0.0 }
 0x8d3   : > { %v3077_v40 = vmax.f32 %v3061_v27, 0.0  ;;  %4686 = vmatmul.mubr.msk.f32.vlgmr.msra.gmra.mrb[68].mxu0 %vm1078_vm1, %v5146_v5  ;;  %5040 = vmatprep.subr.bf16.mxu0 %v5039_v62 }
 0x8d4   : > { %3521 = vst [vmem:[%s6269_s26 + $0x78] sm:$0xff] %v3078_v29  ;;  %5042 = vmatpush3.bf16.msra.mxu0 %v5039_v62  ;;  %4696 = vmatprep.mubr.msk.f32.mxu0 %vm1078_vm1, %v5147_v32 }
 0x8d5   : > { %3520 = vst [vmem:[%s6269_s26 + $0x70] sm:$0xff] %v3077_v40  ;;  %v5043_v46 = vpack.c.bf16 %v3078_v29, %v3077_v40 }
 0x8d7   : > { %5044 = vmatprep.subr.bf16.mxu0 %v5043_v46 }
 0x8d8   : > { %5046 = vmatpush3.bf16.msra.mxu0 %v5043_v46 }
 0x8db   : > { %4697 = vmatmul.mubr.msk.f32.vlgmr.msra.gmra.mrb[70].mxu0 %vm1078_vm1, %v5148_v7 }
 0x996   : > { %v4665_v8 = vpop.f32.mrb[64].mxu0 }
 0x997   : > { %v3145_v48 = vpop.f32.mrb[65].mxu0 }
 0x998   : > { %4731 = vmatprep.mubr.f32.mxu1 %v3145_v48 }
 0x999   : > { %4732 = vmatmul.mubr.f32.vlgmr.msra.gmra.mrb[64].mxu1 %v4665_v8 }
 0x99e   : > { %v4676_v42 = vpop.f32.mrb[66].mxu0 }
 0x99f   : > { %v3220_v10 = vpop.f32.mrb[67].mxu0 }
 0x9a0   : > { %4734 = vmatprep.mubr.f32.mxu1 %v3220_v10 }
 0x9a1   : > { %4735 = vmatmul.mubr.f32.gmra.mrb[66].mxu1 %v4676_v42 }
 0x9a6   : > { %v4687_v9 = vpop.f32.mrb[68].mxu0 }
 0x9a7   : > { %v3295_v0 = vpop.f32.mrb[69].mxu0 }
 0x9a8   : > { %4737 = vmatprep.mubr.f32.mxu1 %v3295_v0 }
 0x9a9   : > { %4738 = vmatmul.mubr.f32.gmra.mrb[68].mxu1 %v4687_v9 }
 0x9ae   : > { %v4698_v16 = vpop.f32.mrb[70].mxu0 }
 0x9af   : > { %v3370_v63 = vpop.f32.mrb[71].mxu0 }
 0x9b0   : > { %4740 = vmatprep.mubr.f32.mxu1 %v3370_v63 }
 0x9b1   : > { %4741 = vmatmul.mubr.f32.gmra.mrb[70].mxu1 %v4698_v16 }
 0x9b2   : > { %5162 = shalt.err (!%p5159_p3)
}
 0x9b3   : > { %s5163_s16 = scalar_lea.hbm %s6346_s27, 2048  ;;  %s5167_s25 = scalar_lea.hbm %s6468_s8, 4096 }
 0x9b4   : > { %p5164_p4 = scmp.ne.s32.totalorder %s6346_s27, %s5163_s16  ;;  %p5168_p9 = scmp.lt.u32.totalorder %s6346_s27, %s6468_s8 }
 0x9b5   : > { %p5169_p10 = scmp.lt.u32.totalorder %s5167_s25, %s5163_s16  ;;  %p5171_p12 = scmp.lt.u32.totalorder %s5163_s16, %s6346_s27 }
 0x9b6   : > { %p5165_p7 = pnand %p5164_p4, %p5337_p5 }
 0x9b7   : > { %p5170_p11 = por %p5169_p10, %p5168_p9 }
 0x9b8   : > { %p5166_p8 = pneg %p5165_p7 }
 0x9b9   : > { %p5172_p13 = por %p5171_p12, %p5170_p11 }
 0x9bb   : > { %p5173_p0 = pnand %p5172_p13, %p5166_p8 }
 0x9bd   : > { %5176 = shalt.err (!%p5173_p0)
}
 0x9be   : > { %s5246_s29 = smov 128   ;;  %s5247_s21 = smov 8   ;;  %v3860_v14 = vld [vmem:[%s6467_s7 + $0x2] ss:$0 sm:$0xff] }
 0x9bf   : > { %5079 = dma.vmem_to_hbm [thread:$0]  (%p5337_p5), %s6348_s24, 2048, %s6346_s27, %s3531_s28, %s5246_s29, %s5246_s29, %s5247_s21  }
 0x9c0   : > { %s3702_s16 = sshll.u32 %s6253_s23, 6  ;;  %s3878_s24 = sshll.u32 %s5320_s13, 10 }
 0x9c1   : > { %s6385_s17 = scalar_lea.vmem [#allocation4], %s3702_s16  ;;  %s6410_s22 = scalar_lea.hbm %s6469_s9, %s3878_s24 }
 0x9c2   : > { %s3567_s27 = sshll.u32 %s6385_s17, 4  ;;  %s3536_s0 = scalar_lea.sflag [#allocation5], %s6253_s23  ;;  %s6412_s27 = int_to_ptr.vmem [resolvable:$true] %s3567_s27 }
 0x9c3   : > { %s5177_s13 = scalar_lea.vmem %s6412_s27, 1024  ;;  %s5248_s14 = smov [#allocation4]  }
 0x9c4   : > { %p5178_p1 = scmp.ne.s32.totalorder %s6412_s27, %s5177_s13  ;;  %s5181_s26 = sshll.u32 %s5248_s14, 4  ;;  %s5182_s26 = int_to_ptr.vmem [resolvable:$false] %s5181_s26 }
 0x9c5   : > { %s5183_s16 = scalar_lea.vmem %s5182_s26, 2048  ;;  %p5184_p4 = scmp.lt.s32.totalorder %s6412_s27, %s5182_s26 }
 0x9c6   : > { %p5179_p2 = pnand %p5178_p1, %p5337_p5  ;;  %p5185_p7 = scmp.lt.s32.totalorder %s5183_s16, %s5177_s13 }
 0x9c8   : > { %p5180_p3 = pneg %p5179_p2  ;;  %p5186_p8 = por %p5185_p7, %p5184_p4 }
 0x9ca   : > { %p5187_p9 = pnand %p5186_p8, %p5180_p3 }
 0xa6c   : > { %v4733_v24 = vpop.f32.mrb[64].mxu1 }
 0xa6d   : > { %v3457_v18 = vadd.f32 %v4733_v24, %v3860_v14  ;;  %v3451_v25 = vpop.f32.mrb[65].mxu1 }
 0xa6e   : > { %v3452_v54 = vadd.f32 %v3860_v14, %v3451_v25 }
 0xa6f   : > { %v3491_v4 = vadd.f32 %v3457_v18, %v2511_v45 }
 0xa70   : > { %v3490_v21 = vadd.f32 %v3452_v54, %v2510_v41 }
 0xa71   : > { %v3499_v19 = vmax.f32 %v3491_v4, 0.0 }
 0xa72   : > { %v3498_v37 = vmax.f32 %v3490_v21, 0.0 }
 0xa73   : > { %3523 = vst [vmem:[%s6385_s17 + $0x8] sm:$0xff] %v3499_v19 }
 0xa74   : > { %3522 = vst [vmem:[%s6385_s17] sm:$0xff] %v3498_v37  ;;  %v4736_v1 = vpop.f32.mrb[66].mxu1 }
 0xa75   : > { %v3467_v17 = vadd.f32 %v4736_v1, %v3860_v14  ;;  %v3461_v55 = vpop.f32.mrb[67].mxu1 }
 0xa76   : > { %v3462_v36 = vadd.f32 %v3860_v14, %v3461_v55 }
 0xa77   : > { %v3493_v33 = vadd.f32 %v3467_v17, %v2513_v59 }
 0xa78   : > { %v3492_v30 = vadd.f32 %v3462_v36, %v2512_v3 }
 0xa79   : > { %v3501_v45 = vmax.f32 %v3493_v33, 0.0 }
 0xa7a   : > { %v3500_v41 = vmax.f32 %v3492_v30, 0.0 }
 0xa7b   : > { %3525 = vst [vmem:[%s6385_s17 + $0x18] sm:$0xff] %v3501_v45 }
 0xa7c   : > { %3524 = vst [vmem:[%s6385_s17 + $0x10] sm:$0xff] %v3500_v41  ;;  %v4739_v31 = vpop.f32.mrb[68].mxu1 }
 0xa7d   : > { %v3477_v44 = vadd.f32 %v4739_v31, %v3860_v14  ;;  %v3471_v22 = vpop.f32.mrb[69].mxu1 }
 0xa7e   : > { %v3472_v23 = vadd.f32 %v3860_v14, %v3471_v22 }
 0xa7f   : > { %v3495_v49 = vadd.f32 %v3477_v44, %v2515_v43 }
 0xa80   : > { %v3494_v53 = vadd.f32 %v3472_v23, %v2514_v11 }
 0xa81   : > { %v3503_v59 = vmax.f32 %v3495_v49, 0.0 }
 0xa82   : > { %v3502_v15 = vmax.f32 %v3494_v53, 0.0 }
 0xa83   : > { %3527 = vst [vmem:[%s6385_s17 + $0x28] sm:$0xff] %v3503_v59 }
 0xa84   : > { %3526 = vst [vmem:[%s6385_s17 + $0x20] sm:$0xff] %v3502_v15  ;;  %v4742_v3 = vpop.f32.mrb[70].mxu1 }
 0xa85   : > { %v3487_v60 = vadd.f32 %v4742_v3, %v3860_v14  ;;  %v3481_v20 = vpop.f32.mrb[71].mxu1 }
 0xa86   : > { %v3482_v26 = vadd.f32 %v3860_v14, %v3481_v20 }
 0xa87   : > { %v3497_v34 = vadd.f32 %v3487_v60, %v2517_v56 }
 0xa88   : > { %v3496_v12 = vadd.f32 %v3482_v26, %v2516_v38 }
 0xa89   : > { %v3505_v47 = vmax.f32 %v3497_v34, 0.0 }
 0xa8a   : > { %v3504_v43 = vmax.f32 %v3496_v12, 0.0 }
 0xa8b   : > { %3529 = vst [vmem:[%s6385_s17 + $0x38] sm:$0xff] %v3505_v47 }
 0xa8c   : > { %3528 = vst [vmem:[%s6385_s17 + $0x30] sm:$0xff] %v3504_v43 }
 0xa8d   : > { %5190 = shalt.err (!%p5187_p9)
}
 0xa8e   : > { %s5191_s17 = scalar_lea.hbm %s6410_s22, 1024  ;;  %s5195_s25 = scalar_lea.hbm %s6469_s9, 2048 }
 0xa8f   : > { %p5192_p10 = scmp.ne.s32.totalorder %s6410_s22, %s5191_s17  ;;  %p5196_p13 = scmp.lt.u32.totalorder %s6410_s22, %s6469_s9 }
 0xa90   : > { %p5197_p0 = scmp.lt.u32.totalorder %s5195_s25, %s5191_s17  ;;  %p5199_p2 = scmp.lt.u32.totalorder %s5191_s17, %s6410_s22 }
 0xa91   : > { %p5193_p11 = pnand %p5192_p10, %p5337_p5 }
 0xa92   : > { %p5198_p1 = por %p5197_p0, %p5196_p13 }
 0xa93   : > { %p5194_p12 = pneg %p5193_p11 }
 0xa94   : > { %p5200_p3 = por %p5199_p2, %p5198_p1 }
 0xa96   : > { %p5201_p4 = pnand %p5200_p3, %p5194_p12 }
 0xa98   : > { %5204 = shalt.err (!%p5201_p4)
}
 0xa99   : > { %5080 = dma.vmem_to_hbm [thread:$0]  (%p5337_p5), %s6412_s27, 1024, %s6410_s22, %s3536_s0, %s5246_s29, %s5246_s29, %s5247_s21  }
 0xa9a PF: > { %p5090_p7 = scmp.ge.s32.totalorder %s5243_s12, 2  ;;  %s3582_s13 = sand.u32 1, %s5231_s30  }
 0xa9b   : > { %s3583_s16 = scalar_lea.sflag [#allocation3], %s3582_s13 }
 0xa9c   : > { %p5084_p8 = pnand %p5090_p7, %p5341_p6 }
 0xa9e   : > { %5222 = dma.done.wait (!%p5084_p8), %s3583_s16, 2048  }
 0xa9f   : > { %5224 = vsyncadd (!%p5084_p8), %s3583_s16, 4294965248  ;;  %s3592_s19 = scalar_lea.sflag [#allocation5], %s3582_s13 }
 0xaa0   : > { %5226 = dma.done.wait (!%p5084_p8), %s3592_s19, 1024  }
 0xaa1   : > { %5228 = vsyncadd (!%p5084_p8), %s3592_s19, 4294966272  ;;  %p23_p5 = scmp.ge.s32.totalorder %s5324_s15, 4   ;;  %s6498_s30 = smov %s5235_s10 }
 0xaa2   : > { %s6499_s10 = smov %s5239_s11  ;;  %s6500_s11 = smov %s5335_s18 }
 0xaa3   : > { %s6501_s12 = smov %s5324_s15  ;;  %25 = sbr.rel (!%p23_p5) target bundleno = 7 (0x7), region = 121 }
 0xaaa   :  { %3597 = vsyncpa [#allocation3], 1 }
 0xaab   :  { %3599 = vsyncpa [#allocation3 + $0x1], 1 }
 0xaac   :  { %3600 = vsyncpa [#allocation5], 1 }
 0xaad   :  { %3602 = vsyncpa [#allocation5 + $0x1], 1 }

</bundles_post_ra>
